<compile_context>
chip_gen: v7x
topology: tpu7x:2x2x1
jax: 0.10.0
libtpu: 0.0.40
codegen_flags: <defaults>
</compile_context>

<pallas_src>
import functools
import math

import jax
import jax.numpy as jnp
from jax.experimental import pallas as pl
from jax.experimental.pallas import tpu as pltpu


# --------------------------------- kernel ----------------------------------

def isab_kernel(x_ref, qpre_ref,
                wx_ref, bx_ref, wo0_ref, bo0_ref,
                wh_ref, bh_ref, wo1_ref, bo1_ref,
                o_ref, ctx0_ref, ctx1_ref,
                *, num_heads, dim_V, mxu_dtype, scale, approx_recip):
    """Fused ISAB forward (ln=False, no masks) for a tile of Bt batch elements.

    Inputs (host pre-transposed / pre-fused weights):
      x_ref:   (Bt, N, dX)        activations (bf16 on the fast path)
      qpre_ref:(Ni, dV) f32       inducing points already through fc_q0
      wx_ref:  (dX, 3*dV)         [Wk0.T | Wv0.T | Wq1.T]     bx_ref: (1, 3*dV) f32
      wo0_ref: (dV, dV)           Wo0.T                        bo0_ref:(1, dV)  f32
      wh_ref:  (dV, 2*dV)         [Wk1.T | Wv1.T]              bh_ref: (1, 2*dV) f32
      wo1_ref: (dV, dV)           Wo1.T                        bo1_ref:(1, dV)  f32
    Scratch:
      ctx0_ref:(Bt, Ni, dV) f32   mab0 merged-head attention context
      ctx1_ref:(Bt, N,  dV) f32   mab1 merged-head attention context
    """
    f32 = jnp.float32
    H, dV = num_heads, dim_V
    ds = dV // H
    Bt, N, dX = x_ref.shape
    Ni = qpre_ref.shape[0]

    def attend(qh, kh, vh):
        # qh: (Bt, Nq, ds), kh/vh: (Bt, Nk, ds).  f32 softmax, EUP reciprocal.
        # NOTE: original Set Transformer scales by 1/sqrt(dim_V), not head_dim.
        s = jnp.einsum('bqd,bkd->bqk', qh.astype(mxu_dtype), kh.astype(mxu_dtype),
                       preferred_element_type=f32) * scale
        s = s - jnp.max(s, axis=-1, keepdims=True)
        e = jnp.exp(s)
        a = e * pl.reciprocal(jnp.sum(e, axis=-1, keepdims=True), approx=approx_recip)
        return jnp.einsum('bqk,bkd->bqd', a.astype(mxu_dtype), vh.astype(mxu_dtype),
                          preferred_element_type=f32)

    # ---- X-side projections: one wide MXU matmul -> [K0 | V0 | Q1] ----------
    x2 = x_ref[...].reshape(Bt * N, dX).astype(mxu_dtype)
    p = jnp.dot(x2, wx_ref[...], preferred_element_type=f32) + bx_ref[...]
    p3 = p.reshape(Bt, N, 3 * dV)          # cols [0:dV]=K0, [dV:2dV]=V0, [2dV:]=Q1

    # ---- MAB0: Q = inducing points (pre-projected, batch-invariant) ---------
    qp0 = qpre_ref[...]                                     # (Ni, dV) f32
    # One hoisted broadcast keeps the score einsum in the 3-D batched form
    # that Mosaic lowers natively (tiny: Bt*Ni*dV f32).
    qp0_b = jnp.broadcast_to(qp0[None], (Bt, Ni, dV))
    for h in range(H):                                       # static unroll over heads
        lo, hi = h * ds, (h + 1) * ds
        ctx0_ref[:, :, lo:hi] = attend(qp0_b[:, :, lo:hi],
                                       p3[:, :, lo:hi],
                                       p3[:, :, dV + lo:dV + hi])
    o0 = (qp0_b + ctx0_ref[...]).reshape(Bt * Ni, dV)        # residual, merged heads
    ff0 = jnp.dot(o0.astype(mxu_dtype), wo0_ref[...],
                  preferred_element_type=f32) + bo0_ref[...]
    hmid = o0 + jnp.maximum(ff0, 0.0)                        # (Bt*Ni, dV), stays in VMEM

    # ---- MAB1: Q = X (fc_q1 already in p3), K = hmid ------------------------
    ph = jnp.dot(hmid.astype(mxu_dtype), wh_ref[...],
                 preferred_element_type=f32) + bh_ref[...]
    ph3 = ph.reshape(Bt, Ni, 2 * dV)       # cols [0:dV]=K1, [dV:]=V1
    qp1 = p3[:, :, 2 * dV:]                # (Bt, N, dV)
    for h in range(H):
        lo, hi = h * ds, (h + 1) * ds
        ctx1_ref[:, :, lo:hi] = attend(qp1[:, :, lo:hi],
                                       ph3[:, :, lo:hi],
                                       ph3[:, :, dV + lo:dV + hi])
    o1 = (qp1 + ctx1_ref[...]).reshape(Bt * N, dV)
    ff1 = jnp.dot(o1.astype(mxu_dtype), wo1_ref[...],
                  preferred_element_type=f32) + bo1_ref[...]
    out = o1 + jnp.maximum(ff1, 0.0)
    o_ref[...] = out.reshape(Bt, N, dV).astype(o_ref.dtype)


# -------------------------------- wrappers ----------------------------------

def _vmem_capacity_bytes():
    try:
        return int(pltpu.get_tpu_info().vmem_capacity_bytes)
    except Exception:
        return 64 * 1024 * 1024         # conservative default (v7x per-TC)


def _pick_batch_tile(B, N, Ni, dX, dV, H, *, x_isz, out_isz, vmem_budget):
    """Largest batch tile whose per-step activation footprint fits the budget,
    capped at ~1k flattened rows per grid step."""
    f = 4  # f32 intermediates
    per_elem = (
        2 * N * dX * x_isz              # input tile (double-buffered)
        + 2 * N * dV * out_isz          # output tile (double-buffered)
        + 3 * N * 3 * dV * f            # P / P3 / per-head slices
        + 3 * Ni * N * f * H            # mab0 scores/exp/A (conservative)
        + 4 * Ni * dV * f               # ctx0 scratch, residual, ff0, hmid
        + 3 * Ni * 2 * dV * f           # PH / slices
        + 3 * N * Ni * f * H            # mab1 scores/exp/A
        + 4 * N * dV * f                # ctx1 scratch, residual, ff1, out
    )
    bt_vmem = max(1, vmem_budget // max(per_elem, 1))
    bt_rows = max(1, 1024 // max(N, Ni, 1))
    return int(max(1, min(B, bt_vmem, bt_rows)))


def isab_forward(X, isab_params, num_heads, *, mxu_dtype=jnp.bfloat16):
    """ISAB.forward(X) with ln=False, mask=None, query_mask=None."""
    I, mab0, mab1 = isab_params
    Wq0, bq0, Wk0, bk0, Wv0, bv0, Wo0, bo0 = mab0
    Wq1, bq1, Wk1, bk1, Wv1, bv1, Wo1, bo1 = mab1
    f32 = jnp.float32
    mxu_dtype = jnp.dtype(mxu_dtype)
    B, N, dX = X.shape
    dV = Wq0.shape[0]
    Ni = I.shape[1]
    H = num_heads
    assert dV % H == 0, "dim_V must be divisible by num_heads"

    # Host-side prep (negligible): pre-transpose + fuse weights; project the
    # batch-invariant inducing points exactly once.
    Qpre = (I[0].astype(f32) @ Wq0.T.astype(f32)) + bq0.astype(f32)          # (Ni, dV)
    Wx = jnp.concatenate([Wk0.T, Wv0.T, Wq1.T], axis=1).astype(mxu_dtype)    # (dX, 3dV)
    bx = jnp.concatenate([bk0, bv0, bq1], axis=1).astype(f32)                # (1, 3dV)
    Wh = jnp.concatenate([Wk1.T, Wv1.T], axis=1).astype(mxu_dtype)           # (dV, 2dV)
    bh = jnp.concatenate([bk1, bv1], axis=1).astype(f32)                     # (1, 2dV)
    Wo0T = Wo0.T.astype(mxu_dtype)
    Wo1T = Wo1.T.astype(mxu_dtype)
    bo0f = bo0.astype(f32)
    bo1f = bo1.astype(f32)

    # bf16 at the HBM boundary on the fast path (halves activation DMA bytes).
    Xk = X.astype(mxu_dtype) if mxu_dtype == jnp.dtype(jnp.bfloat16) else X.astype(f32)

    # Generation-aware tiling / VMEM limit.
    vmem_cap = _vmem_capacity_bytes()
    wt_bytes = (2 * (Wx.size + Wh.size + Wo0T.size + Wo1T.size) * Wx.dtype.itemsize
                + 2 * (bx.size + bh.size + bo0f.size + bo1f.size + Qpre.size) * 4)
    budget = max(1, vmem_cap // 2 - wt_bytes)
    Bt = _pick_batch_tile(B, N, Ni, dX, dV, H,
                          x_isz=Xk.dtype.itemsize, out_isz=jnp.dtype(X.dtype).itemsize,
                          vmem_budget=budget)
    Bp = -(-B // Bt) * Bt
    if Bp != B:                                   # pad batch instead of Bt=1 fallback
        Xk = jnp.pad(Xk, ((0, Bp - B), (0, 0), (0, 0)))
    grid = (Bp // Bt,)

    def const_spec(arr):
        return pl.BlockSpec(arr.shape, lambda b, _nd=arr.ndim: (0,) * _nd)

    kernel = functools.partial(
        isab_kernel, num_heads=H, dim_V=dV, mxu_dtype=mxu_dtype,
        scale=1.0 / math.sqrt(dV),
        approx_recip=(mxu_dtype != jnp.dtype(jnp.float32)))

    out = pl.pallas_call(
        kernel,
        out_shape=jax.ShapeDtypeStruct((Bp, N, dV), X.dtype),
        grid=grid,
        in_specs=[pl.BlockSpec((Bt, N, dX), lambda b: (b, 0, 0)),
                  const_spec(Qpre),
                  const_spec(Wx), const_spec(bx), const_spec(Wo0T), const_spec(bo0f),
                  const_spec(Wh), const_spec(bh), const_spec(Wo1T), const_spec(bo1f)],
        out_specs=pl.BlockSpec((Bt, N, dV), lambda b: (b, 0, 0)),
        scratch_shapes=[pltpu.VMEM((Bt, Ni, dV), jnp.float32),
                        pltpu.VMEM((Bt, N, dV), jnp.float32)],
        compiler_params=pltpu.CompilerParams(
            dimension_semantics=("parallel",),
            vmem_limit_bytes=int(min(vmem_cap * 3 // 4, 128 * 1024 * 1024)),
        ),
    )(Xk, Qpre, Wx, bx, Wo0T, bo0f, Wh, bh, Wo1T, bo1f)

    return out[:B]


# ------------------------- parameter construction ---------------------------

def _linear_params(key, in_dim, out_dim):
    kw, kb = jax.random.split(key)
    bound = 1.0 / math.sqrt(in_dim)
    W = jax.random.uniform(kw, (out_dim, in_dim), jnp.float32, -bound, bound)
    b = jax.random.uniform(kb, (1, out_dim), jnp.float32, -bound, bound)
    return W, b


def _mab_params(key, dim_Q, dim_K, dim_V):
    kq, kk, kv, ko = jax.random.split(key, 4)
    Wq, bq = _linear_params(kq, dim_Q, dim_V)
    Wk, bk = _linear_params(kk, dim_K, dim_V)
    Wv, bv = _linear_params(kv, dim_K, dim_V)
    Wo, bo = _linear_params(ko, dim_V, dim_V)
    return (Wq, bq, Wk, bk, Wv, bv, Wo, bo)


def make_isab_params(key, dim_in, dim_out, num_inds):
    ki, k0, k1 = jax.random.split(key, 3)
    bound = math.sqrt(6.0 / (num_inds + dim_out))      # xavier_uniform on I
    I = jax.random.uniform(ki, (1, num_inds, dim_out), jnp.float32, -bound, bound)
    mab0 = _mab_params(k0, dim_out, dim_in, dim_out)   # MAB(dim_out, dim_in, dim_out)
    mab1 = _mab_params(k1, dim_in, dim_out, dim_out)   # MAB(dim_in, dim_out, dim_out)
    return (I, mab0, mab1)


# ------------------------------- reference ----------------------------------

def _mab_ref(Q, K, params, num_heads):
    Wq, bq, Wk, bk, Wv, bv, Wo, bo = params
    dim_V = Wq.shape[0]
    Qp = Q @ Wq.T + bq
    Kp = K @ Wk.T + bk
    Vp = K @ Wv.T + bv
    ds = dim_V // num_heads
    B = Q.shape[0]

    def split_heads(x):   # torch.cat(x.split(ds, 2), 0)
        return jnp.concatenate([x[..., h * ds:(h + 1) * ds] for h in range(num_heads)], 0)

    Q_, K_, V_ = split_heads(Qp), split_heads(Kp), split_heads(Vp)
    attn = jnp.einsum('bqd,bkd->bqk', Q_, K_) / math.sqrt(dim_V)
    A = jax.nn.softmax(attn, axis=2)
    O_ = Q_ + jnp.einsum('bqk,bkd->bqd', A, V_)
    O = jnp.concatenate([O_[h * B:(h + 1) * B] for h in range(num_heads)], 2)
    return O + jax.nn.relu(O @ Wo.T + bo)


def _isab_ref(X, isab_params, num_heads):
    I, mab0, mab1 = isab_params
    B = X.shape[0]
    I_rep = jnp.broadcast_to(I, (B,) + I.shape[1:])
    H = _mab_ref(I_rep, X, mab0, num_heads)
    return _mab_ref(X, H, mab1, num_heads)


# ---------------------------------- main -------------------------------------

if __name__ == "__main__":
    B, N = 2, 8              # batch, set size
    dim_in, dim_out = 4, 32
    num_heads, num_inds = 4, 8

    key = jax.random.PRNGKey(0)
    kx, kp = jax.random.split(key)
    X = jax.random.normal(kx, (B, N, dim_in), jnp.float32)
    params = make_isab_params(kp, dim_in, dim_out, num_inds)

    ref = _isab_ref(X, params, num_heads)

    # Exact-math path (f32 MXU operands, exact reciprocal) -- tight check.
    out_f32 = jax.block_until_ready(
        isab_forward(X, params, num_heads, mxu_dtype=jnp.float32))
    assert out_f32.shape == (B, N, dim_out)
    assert jnp.allclose(out_f32, ref, atol=1e-2, rtol=1e-2), "f32 path mismatch"

    # Default fast path (bf16 HBM boundary + MXU operands, f32 accumulation).
    out = jax.block_until_ready(isab_forward(X, params, num_heads))
    assert out.shape == (B, N, dim_out)
    assert jnp.allclose(out, ref, atol=5e-2, rtol=5e-2), "bf16 path mismatch"

    print("KERNEL_OK")
</pallas_src>

<mosaic_0001>
module attributes {stable_mosaic.version = 11 : i64} {
  func.func @isab_kernel(%arg0: i32, %arg1: memref<2x8x4xf32, #tpu.memory_space<vmem>>, %arg2: memref<8x32xf32, #tpu.memory_space<vmem>>, %arg3: memref<4x96xf32, #tpu.memory_space<vmem>>, %arg4: memref<1x96xf32, #tpu.memory_space<vmem>>, %arg5: memref<32x32xf32, #tpu.memory_space<vmem>>, %arg6: memref<1x32xf32, #tpu.memory_space<vmem>>, %arg7: memref<32x64xf32, #tpu.memory_space<vmem>>, %arg8: memref<1x64xf32, #tpu.memory_space<vmem>>, %arg9: memref<32x32xf32, #tpu.memory_space<vmem>>, %arg10: memref<1x32xf32, #tpu.memory_space<vmem>>, %arg11: memref<2x8x32xf32, #tpu.memory_space<vmem>>, %arg12: memref<2x8x32xf32, #tpu.memory_space<vmem>>, %arg13: memref<2x8x32xf32, #tpu.memory_space<vmem>>) attributes {dimension_semantics = [#tpu.dimension_semantics<parallel>], iteration_bounds = array<i64: 1>, scalar_prefetch = 0 : i64, scratch_operands = 2 : i64, tpu.core_type = #tpu.core_type<tc>, window_params = [{transform_indices = @transform_0, window_bounds = array<i64: 2, 8, 4>}, {pipeline_mode = #tpu.pipeline_mode<synchronous>, transform_indices = @transform_1, window_bounds = array<i64: 8, 32>}, {pipeline_mode = #tpu.pipeline_mode<synchronous>, transform_indices = @transform_2, window_bounds = array<i64: 4, 96>}, {pipeline_mode = #tpu.pipeline_mode<synchronous>, transform_indices = @transform_3, window_bounds = array<i64: 1, 96>}, {pipeline_mode = #tpu.pipeline_mode<synchronous>, transform_indices = @transform_4, window_bounds = array<i64: 32, 32>}, {pipeline_mode = #tpu.pipeline_mode<synchronous>, transform_indices = @transform_5, window_bounds = array<i64: 1, 32>}, {pipeline_mode = #tpu.pipeline_mode<synchronous>, transform_indices = @transform_6, window_bounds = array<i64: 32, 64>}, {pipeline_mode = #tpu.pipeline_mode<synchronous>, transform_indices = @transform_7, window_bounds = array<i64: 1, 64>}, {pipeline_mode = #tpu.pipeline_mode<synchronous>, transform_indices = @transform_8, window_bounds = array<i64: 32, 32>}, {pipeline_mode = #tpu.pipeline_mode<synchronous>, transform_indices = @transform_9, window_bounds = array<i64: 1, 32>}, {transform_indices = @transform_10, window_bounds = array<i64: 2, 8, 32>}]} {
    %c0 = arith.constant 0 : index
    %c0_0 = arith.constant 0 : index
    %c0_1 = arith.constant 0 : index
    %0 = vector.load %arg1[%c0, %c0_0, %c0_1] : memref<2x8x4xf32, #tpu.memory_space<vmem>>, vector<2x8x4xf32>
    %1 = vector.shape_cast %0 : vector<2x8x4xf32> to vector<16x4xf32>
    %c0_2 = arith.constant 0 : index
    %c0_3 = arith.constant 0 : index
    %2 = vector.load %arg3[%c0_2, %c0_3] : memref<4x96xf32, #tpu.memory_space<vmem>>, vector<4x96xf32>
    %cst = arith.constant dense<0.000000e+00> : vector<16x96xf32>
    %3 = tpu.matmul %1, %2, %cst {dimension_numbers = #tpu.dot_dimension_numbers<[1], [0], [0], [1], [0, 0, 1, 1], [], []>} : vector<16x4xf32>, vector<4x96xf32>, vector<16x96xf32> -> vector<16x96xf32>
    %c0_4 = arith.constant 0 : index
    %c0_5 = arith.constant 0 : index
    %4 = vector.load %arg4[%c0_4, %c0_5] : memref<1x96xf32, #tpu.memory_space<vmem>>, vector<1x96xf32>
    %5 = vector.broadcast %4 : vector<1x96xf32> to vector<16x96xf32>
    %6 = arith.addf %3, %5 : vector<16x96xf32>
    %7 = vector.shape_cast %6 : vector<16x96xf32> to vector<2x8x96xf32>
    %c0_6 = arith.constant 0 : index
    %c0_7 = arith.constant 0 : index
    %8 = vector.load %arg2[%c0_6, %c0_7] : memref<8x32xf32, #tpu.memory_space<vmem>>, vector<8x32xf32>
    %9 = vector.shape_cast %8 : vector<8x32xf32> to vector<1x8x32xf32>
    %10 = vector.shape_cast %9 : vector<1x8x32xf32> to vector<1x8x32xf32>
    %11 = vector.broadcast %10 : vector<1x8x32xf32> to vector<2x8x32xf32>
    %12 = vector.extract_strided_slice %11 {offsets = [0, 0, 0], sizes = [2, 8, 8], strides = [1, 1, 1]} : vector<2x8x32xf32> to vector<2x8x8xf32>
    %13 = vector.extract_strided_slice %7 {offsets = [0, 0, 0], sizes = [2, 8, 8], strides = [1, 1, 1]} : vector<2x8x96xf32> to vector<2x8x8xf32>
    %14 = vector.extract_strided_slice %7 {offsets = [0, 0, 32], sizes = [2, 8, 8], strides = [1, 1, 1]} : vector<2x8x96xf32> to vector<2x8x8xf32>
    "tpu.trace_start"() <{level = 10 : i32, message = "bqd,bkd->bqk"}> : () -> ()
    %cst_8 = arith.constant dense<0.000000e+00> : vector<2x8x8xf32>
    %15 = tpu.matmul %12, %13, %cst_8 {dimension_numbers = #tpu.dot_dimension_numbers<[2], [2], [1], [1], [0, 0, 0, 1, 1, 1], [0], [0]>} : vector<2x8x8xf32>, vector<2x8x8xf32>, vector<2x8x8xf32> -> vector<2x8x8xf32>
    "tpu.trace_stop"() : () -> ()
    %cst_9 = arith.constant 0.176776692 : f32
    %16 = vector.broadcast %cst_9 : f32 to vector<2x8x8xf32>
    %17 = arith.mulf %15, %16 : vector<2x8x8xf32>
    %cst_10 = arith.constant dense<0xFF800000> : vector<2x8xf32>
    %18 = vector.multi_reduction <maximumf>, %17, %cst_10 [2] : vector<2x8x8xf32> to vector<2x8xf32>
    %19 = vector.shape_cast %18 : vector<2x8xf32> to vector<2x8x1xf32>
    %20 = vector.broadcast %19 : vector<2x8x1xf32> to vector<2x8x8xf32>
    %21 = arith.subf %17, %20 : vector<2x8x8xf32>
    %22 = math.exp %21 : vector<2x8x8xf32>
    %cst_11 = arith.constant dense<0.000000e+00> : vector<2x8xf32>
    %23 = vector.multi_reduction <add>, %22, %cst_11 [2] : vector<2x8x8xf32> to vector<2x8xf32>
    %24 = vector.shape_cast %23 : vector<2x8xf32> to vector<2x8x1xf32>
    %25 = tpu.reciprocal %24 : vector<2x8x1xf32> -> vector<2x8x1xf32>
    %26 = vector.broadcast %25 : vector<2x8x1xf32> to vector<2x8x8xf32>
    %27 = arith.mulf %22, %26 : vector<2x8x8xf32>
    "tpu.trace_start"() <{level = 10 : i32, message = "bqk,bkd->bqd"}> : () -> ()
    %cst_12 = arith.constant dense<0.000000e+00> : vector<2x8x8xf32>
    %28 = tpu.matmul %27, %14, %cst_12 {dimension_numbers = #tpu.dot_dimension_numbers<[2], [1], [1], [2], [0, 0, 0, 1, 1, 2], [0], [0]>} : vector<2x8x8xf32>, vector<2x8x8xf32>, vector<2x8x8xf32> -> vector<2x8x8xf32>
    "tpu.trace_stop"() : () -> ()
    %c0_13 = arith.constant 0 : index
    %c0_14 = arith.constant 0 : index
    %c0_15 = arith.constant 0 : index
    %29 = vector.load %arg12[%c0_13, %c0_14, %c0_15] : memref<2x8x32xf32, #tpu.memory_space<vmem>>, vector<2x8x8xf32>
    tpu.vector_store %arg12[%c0_13, %c0_14, %c0_15], %28 {strides = array<i32>} : memref<2x8x32xf32, #tpu.memory_space<vmem>>, vector<2x8x8xf32>,
    %30 = vector.extract_strided_slice %11 {offsets = [0, 0, 8], sizes = [2, 8, 8], strides = [1, 1, 1]} : vector<2x8x32xf32> to vector<2x8x8xf32>
    %31 = vector.extract_strided_slice %7 {offsets = [0, 0, 8], sizes = [2, 8, 8], strides = [1, 1, 1]} : vector<2x8x96xf32> to vector<2x8x8xf32>
    %32 = vector.extract_strided_slice %7 {offsets = [0, 0, 40], sizes = [2, 8, 8], strides = [1, 1, 1]} : vector<2x8x96xf32> to vector<2x8x8xf32>
    "tpu.trace_start"() <{level = 10 : i32, message = "bqd,bkd->bqk"}> : () -> ()
    %cst_16 = arith.constant dense<0.000000e+00> : vector<2x8x8xf32>
    %33 = tpu.matmul %30, %31, %cst_16 {dimension_numbers = #tpu.dot_dimension_numbers<[2], [2], [1], [1], [0, 0, 0, 1, 1, 1], [0], [0]>} : vector<2x8x8xf32>, vector<2x8x8xf32>, vector<2x8x8xf32> -> vector<2x8x8xf32>
    "tpu.trace_stop"() : () -> ()
    %cst_17 = arith.constant 0.176776692 : f32
    %34 = vector.broadcast %cst_17 : f32 to vector<2x8x8xf32>
    %35 = arith.mulf %33, %34 : vector<2x8x8xf32>
    %cst_18 = arith.constant dense<0xFF800000> : vector<2x8xf32>
    %36 = vector.multi_reduction <maximumf>, %35, %cst_18 [2] : vector<2x8x8xf32> to vector<2x8xf32>
    %37 = vector.shape_cast %36 : vector<2x8xf32> to vector<2x8x1xf32>
    %38 = vector.broadcast %37 : vector<2x8x1xf32> to vector<2x8x8xf32>
    %39 = arith.subf %35, %38 : vector<2x8x8xf32>
    %40 = math.exp %39 : vector<2x8x8xf32>
    %cst_19 = arith.constant dense<0.000000e+00> : vector<2x8xf32>
    %41 = vector.multi_reduction <add>, %40, %cst_19 [2] : vector<2x8x8xf32> to vector<2x8xf32>
    %42 = vector.shape_cast %41 : vector<2x8xf32> to vector<2x8x1xf32>
    %43 = tpu.reciprocal %42 : vector<2x8x1xf32> -> vector<2x8x1xf32>
    %44 = vector.broadcast %43 : vector<2x8x1xf32> to vector<2x8x8xf32>
    %45 = arith.mulf %40, %44 : vector<2x8x8xf32>
    "tpu.trace_start"() <{level = 10 : i32, message = "bqk,bkd->bqd"}> : () -> ()
    %cst_20 = arith.constant dense<0.000000e+00> : vector<2x8x8xf32>
    %46 = tpu.matmul %45, %32, %cst_20 {dimension_numbers = #tpu.dot_dimension_numbers<[2], [1], [1], [2], [0, 0, 0, 1, 1, 2], [0], [0]>} : vector<2x8x8xf32>, vector<2x8x8xf32>, vector<2x8x8xf32> -> vector<2x8x8xf32>
    "tpu.trace_stop"() : () -> ()
    %c0_21 = arith.constant 0 : index
    %c0_22 = arith.constant 0 : index
    %c8 = arith.constant 8 : index
    %47 = vector.load %arg12[%c0_21, %c0_22, %c8] : memref<2x8x32xf32, #tpu.memory_space<vmem>>, vector<2x8x8xf32>
    tpu.vector_store %arg12[%c0_21, %c0_22, %c8], %46 {strides = array<i32>} : memref<2x8x32xf32, #tpu.memory_space<vmem>>, vector<2x8x8xf32>,
    %48 = vector.extract_strided_slice %11 {offsets = [0, 0, 16], sizes = [2, 8, 8], strides = [1, 1, 1]} : vector<2x8x32xf32> to vector<2x8x8xf32>
    %49 = vector.extract_strided_slice %7 {offsets = [0, 0, 16], sizes = [2, 8, 8], strides = [1, 1, 1]} : vector<2x8x96xf32> to vector<2x8x8xf32>
    %50 = vector.extract_strided_slice %7 {offsets = [0, 0, 48], sizes = [2, 8, 8], strides = [1, 1, 1]} : vector<2x8x96xf32> to vector<2x8x8xf32>
    "tpu.trace_start"() <{level = 10 : i32, message = "bqd,bkd->bqk"}> : () -> ()
    %cst_23 = arith.constant dense<0.000000e+00> : vector<2x8x8xf32>
    %51 = tpu.matmul %48, %49, %cst_23 {dimension_numbers = #tpu.dot_dimension_numbers<[2], [2], [1], [1], [0, 0, 0, 1, 1, 1], [0], [0]>} : vector<2x8x8xf32>, vector<2x8x8xf32>, vector<2x8x8xf32> -> vector<2x8x8xf32>
    "tpu.trace_stop"() : () -> ()
    %cst_24 = arith.constant 0.176776692 : f32
    %52 = vector.broadcast %cst_24 : f32 to vector<2x8x8xf32>
    %53 = arith.mulf %51, %52 : vector<2x8x8xf32>
    %cst_25 = arith.constant dense<0xFF800000> : vector<2x8xf32>
    %54 = vector.multi_reduction <maximumf>, %53, %cst_25 [2] : vector<2x8x8xf32> to vector<2x8xf32>
    %55 = vector.shape_cast %54 : vector<2x8xf32> to vector<2x8x1xf32>
    %56 = vector.broadcast %55 : vector<2x8x1xf32> to vector<2x8x8xf32>
    %57 = arith.subf %53, %56 : vector<2x8x8xf32>
    %58 = math.exp %57 : vector<2x8x8xf32>
    %cst_26 = arith.constant dense<0.000000e+00> : vector<2x8xf32>
    %59 = vector.multi_reduction <add>, %58, %cst_26 [2] : vector<2x8x8xf32> to vector<2x8xf32>
    %60 = vector.shape_cast %59 : vector<2x8xf32> to vector<2x8x1xf32>
    %61 = tpu.reciprocal %60 : vector<2x8x1xf32> -> vector<2x8x1xf32>
    %62 = vector.broadcast %61 : vector<2x8x1xf32> to vector<2x8x8xf32>
    %63 = arith.mulf %58, %62 : vector<2x8x8xf32>
    "tpu.trace_start"() <{level = 10 : i32, message = "bqk,bkd->bqd"}> : () -> ()
    %cst_27 = arith.constant dense<0.000000e+00> : vector<2x8x8xf32>
    %64 = tpu.matmul %63, %50, %cst_27 {dimension_numbers = #tpu.dot_dimension_numbers<[2], [1], [1], [2], [0, 0, 0, 1, 1, 2], [0], [0]>} : vector<2x8x8xf32>, vector<2x8x8xf32>, vector<2x8x8xf32> -> vector<2x8x8xf32>
    "tpu.trace_stop"() : () -> ()
    %c0_28 = arith.constant 0 : index
    %c0_29 = arith.constant 0 : index
    %c16 = arith.constant 16 : index
    %65 = vector.load %arg12[%c0_28, %c0_29, %c16] : memref<2x8x32xf32, #tpu.memory_space<vmem>>, vector<2x8x8xf32>
    tpu.vector_store %arg12[%c0_28, %c0_29, %c16], %64 {strides = array<i32>} : memref<2x8x32xf32, #tpu.memory_space<vmem>>, vector<2x8x8xf32>,
    %66 = vector.extract_strided_slice %11 {offsets = [0, 0, 24], sizes = [2, 8, 8], strides = [1, 1, 1]} : vector<2x8x32xf32> to vector<2x8x8xf32>
    %67 = vector.extract_strided_slice %7 {offsets = [0, 0, 24], sizes = [2, 8, 8], strides = [1, 1, 1]} : vector<2x8x96xf32> to vector<2x8x8xf32>
    %68 = vector.extract_strided_slice %7 {offsets = [0, 0, 56], sizes = [2, 8, 8], strides = [1, 1, 1]} : vector<2x8x96xf32> to vector<2x8x8xf32>
    "tpu.trace_start"() <{level = 10 : i32, message = "bqd,bkd->bqk"}> : () -> ()
    %cst_30 = arith.constant dense<0.000000e+00> : vector<2x8x8xf32>
    %69 = tpu.matmul %66, %67, %cst_30 {dimension_numbers = #tpu.dot_dimension_numbers<[2], [2], [1], [1], [0, 0, 0, 1, 1, 1], [0], [0]>} : vector<2x8x8xf32>, vector<2x8x8xf32>, vector<2x8x8xf32> -> vector<2x8x8xf32>
    "tpu.trace_stop"() : () -> ()
    %cst_31 = arith.constant 0.176776692 : f32
    %70 = vector.broadcast %cst_31 : f32 to vector<2x8x8xf32>
    %71 = arith.mulf %69, %70 : vector<2x8x8xf32>
    %cst_32 = arith.constant dense<0xFF800000> : vector<2x8xf32>
    %72 = vector.multi_reduction <maximumf>, %71, %cst_32 [2] : vector<2x8x8xf32> to vector<2x8xf32>
    %73 = vector.shape_cast %72 : vector<2x8xf32> to vector<2x8x1xf32>
    %74 = vector.broadcast %73 : vector<2x8x1xf32> to vector<2x8x8xf32>
    %75 = arith.subf %71, %74 : vector<2x8x8xf32>
    %76 = math.exp %75 : vector<2x8x8xf32>
    %cst_33 = arith.constant dense<0.000000e+00> : vector<2x8xf32>
    %77 = vector.multi_reduction <add>, %76, %cst_33 [2] : vector<2x8x8xf32> to vector<2x8xf32>
    %78 = vector.shape_cast %77 : vector<2x8xf32> to vector<2x8x1xf32>
    %79 = tpu.reciprocal %78 : vector<2x8x1xf32> -> vector<2x8x1xf32>
    %80 = vector.broadcast %79 : vector<2x8x1xf32> to vector<2x8x8xf32>
    %81 = arith.mulf %76, %80 : vector<2x8x8xf32>
    "tpu.trace_start"() <{level = 10 : i32, message = "bqk,bkd->bqd"}> : () -> ()
    %cst_34 = arith.constant dense<0.000000e+00> : vector<2x8x8xf32>
    %82 = tpu.matmul %81, %68, %cst_34 {dimension_numbers = #tpu.dot_dimension_numbers<[2], [1], [1], [2], [0, 0, 0, 1, 1, 2], [0], [0]>} : vector<2x8x8xf32>, vector<2x8x8xf32>, vector<2x8x8xf32> -> vector<2x8x8xf32>
    "tpu.trace_stop"() : () -> ()
    %c0_35 = arith.constant 0 : index
    %c0_36 = arith.constant 0 : index
    %c24 = arith.constant 24 : index
    %83 = vector.load %arg12[%c0_35, %c0_36, %c24] : memref<2x8x32xf32, #tpu.memory_space<vmem>>, vector<2x8x8xf32>
    tpu.vector_store %arg12[%c0_35, %c0_36, %c24], %82 {strides = array<i32>} : memref<2x8x32xf32, #tpu.memory_space<vmem>>, vector<2x8x8xf32>,
    %c0_37 = arith.constant 0 : index
    %c0_38 = arith.constant 0 : index
    %c0_39 = arith.constant 0 : index
    %84 = vector.load %arg12[%c0_37, %c0_38, %c0_39] : memref<2x8x32xf32, #tpu.memory_space<vmem>>, vector<2x8x32xf32>
    %85 = arith.addf %11, %84 : vector<2x8x32xf32>
    %86 = vector.shape_cast %85 : vector<2x8x32xf32> to vector<16x32xf32>
    %c0_40 = arith.constant 0 : index
    %c0_41 = arith.constant 0 : index
    %87 = vector.load %arg5[%c0_40, %c0_41] : memref<32x32xf32, #tpu.memory_space<vmem>>, vector<32x32xf32>
    %cst_42 = arith.constant dense<0.000000e+00> : vector<16x32xf32>
    %88 = tpu.matmul %86, %87, %cst_42 {dimension_numbers = #tpu.dot_dimension_numbers<[1], [0], [0], [1], [0, 0, 1, 1], [], []>} : vector<16x32xf32>, vector<32x32xf32>, vector<16x32xf32> -> vector<16x32xf32>
    %c0_43 = arith.constant 0 : index
    %c0_44 = arith.constant 0 : index
    %89 = vector.load %arg6[%c0_43, %c0_44] : memref<1x32xf32, #tpu.memory_space<vmem>>, vector<1x32xf32>
    %90 = vector.broadcast %89 : vector<1x32xf32> to vector<16x32xf32>
    %91 = arith.addf %88, %90 : vector<16x32xf32>
    %cst_45 = arith.constant 0.000000e+00 : f32
    %92 = vector.broadcast %cst_45 : f32 to vector<16x32xf32>
    %93 = arith.maximumf %91, %92 : vector<16x32xf32>
    %94 = arith.addf %86, %93 : vector<16x32xf32>
    %c0_46 = arith.constant 0 : index
    %c0_47 = arith.constant 0 : index
    %95 = vector.load %arg7[%c0_46, %c0_47] : memref<32x64xf32, #tpu.memory_space<vmem>>, vector<32x64xf32>
    %cst_48 = arith.constant dense<0.000000e+00> : vector<16x64xf32>
    %96 = tpu.matmul %94, %95, %cst_48 {dimension_numbers = #tpu.dot_dimension_numbers<[1], [0], [0], [1], [0, 0, 1, 1], [], []>} : vector<16x32xf32>, vector<32x64xf32>, vector<16x64xf32> -> vector<16x64xf32>
    %c0_49 = arith.constant 0 : index
    %c0_50 = arith.constant 0 : index
    %97 = vector.load %arg8[%c0_49, %c0_50] : memref<1x64xf32, #tpu.memory_space<vmem>>, vector<1x64xf32>
    %98 = vector.broadcast %97 : vector<1x64xf32> to vector<16x64xf32>
    %99 = arith.addf %96, %98 : vector<16x64xf32>
    %100 = vector.shape_cast %99 : vector<16x64xf32> to vector<2x8x64xf32>
    %101 = vector.extract_strided_slice %7 {offsets = [0, 0, 64], sizes = [2, 8, 32], strides = [1, 1, 1]} : vector<2x8x96xf32> to vector<2x8x32xf32>
    %102 = vector.extract_strided_slice %101 {offsets = [0, 0, 0], sizes = [2, 8, 8], strides = [1, 1, 1]} : vector<2x8x32xf32> to vector<2x8x8xf32>
    %103 = vector.extract_strided_slice %100 {offsets = [0, 0, 0], sizes = [2, 8, 8], strides = [1, 1, 1]} : vector<2x8x64xf32> to vector<2x8x8xf32>
    %104 = vector.extract_strided_slice %100 {offsets = [0, 0, 32], sizes = [2, 8, 8], strides = [1, 1, 1]} : vector<2x8x64xf32> to vector<2x8x8xf32>
    "tpu.trace_start"() <{level = 10 : i32, message = "bqd,bkd->bqk"}> : () -> ()
    %cst_51 = arith.constant dense<0.000000e+00> : vector<2x8x8xf32>
    %105 = tpu.matmul %102, %103, %cst_51 {dimension_numbers = #tpu.dot_dimension_numbers<[2], [2], [1], [1], [0, 0, 0, 1, 1, 1], [0], [0]>} : vector<2x8x8xf32>, vector<2x8x8xf32>, vector<2x8x8xf32> -> vector<2x8x8xf32>
    "tpu.trace_stop"() : () -> ()
    %cst_52 = arith.constant 0.176776692 : f32
    %106 = vector.broadcast %cst_52 : f32 to vector<2x8x8xf32>
    %107 = arith.mulf %105, %106 : vector<2x8x8xf32>
    %cst_53 = arith.constant dense<0xFF800000> : vector<2x8xf32>
    %108 = vector.multi_reduction <maximumf>, %107, %cst_53 [2] : vector<2x8x8xf32> to vector<2x8xf32>
    %109 = vector.shape_cast %108 : vector<2x8xf32> to vector<2x8x1xf32>
    %110 = vector.broadcast %109 : vector<2x8x1xf32> to vector<2x8x8xf32>
    %111 = arith.subf %107, %110 : vector<2x8x8xf32>
    %112 = math.exp %111 : vector<2x8x8xf32>
    %cst_54 = arith.constant dense<0.000000e+00> : vector<2x8xf32>
    %113 = vector.multi_reduction <add>, %112, %cst_54 [2] : vector<2x8x8xf32> to vector<2x8xf32>
    %114 = vector.shape_cast %113 : vector<2x8xf32> to vector<2x8x1xf32>
    %115 = tpu.reciprocal %114 : vector<2x8x1xf32> -> vector<2x8x1xf32>
    %116 = vector.broadcast %115 : vector<2x8x1xf32> to vector<2x8x8xf32>
    %117 = arith.mulf %112, %116 : vector<2x8x8xf32>
    "tpu.trace_start"() <{level = 10 : i32, message = "bqk,bkd->bqd"}> : () -> ()
    %cst_55 = arith.constant dense<0.000000e+00> : vector<2x8x8xf32>
    %118 = tpu.matmul %117, %104, %cst_55 {dimension_numbers = #tpu.dot_dimension_numbers<[2], [1], [1], [2], [0, 0, 0, 1, 1, 2], [0], [0]>} : vector<2x8x8xf32>, vector<2x8x8xf32>, vector<2x8x8xf32> -> vector<2x8x8xf32>
    "tpu.trace_stop"() : () -> ()
    %c0_56 = arith.constant 0 : index
    %c0_57 = arith.constant 0 : index
    %c0_58 = arith.constant 0 : index
    %119 = vector.load %arg13[%c0_56, %c0_57, %c0_58] : memref<2x8x32xf32, #tpu.memory_space<vmem>>, vector<2x8x8xf32>
    tpu.vector_store %arg13[%c0_56, %c0_57, %c0_58], %118 {strides = array<i32>} : memref<2x8x32xf32, #tpu.memory_space<vmem>>, vector<2x8x8xf32>,
    %120 = vector.extract_strided_slice %101 {offsets = [0, 0, 8], sizes = [2, 8, 8], strides = [1, 1, 1]} : vector<2x8x32xf32> to vector<2x8x8xf32>
    %121 = vector.extract_strided_slice %100 {offsets = [0, 0, 8], sizes = [2, 8, 8], strides = [1, 1, 1]} : vector<2x8x64xf32> to vector<2x8x8xf32>
    %122 = vector.extract_strided_slice %100 {offsets = [0, 0, 40], sizes = [2, 8, 8], strides = [1, 1, 1]} : vector<2x8x64xf32> to vector<2x8x8xf32>
    "tpu.trace_start"() <{level = 10 : i32, message = "bqd,bkd->bqk"}> : () -> ()
    %cst_59 = arith.constant dense<0.000000e+00> : vector<2x8x8xf32>
    %123 = tpu.matmul %120, %121, %cst_59 {dimension_numbers = #tpu.dot_dimension_numbers<[2], [2], [1], [1], [0, 0, 0, 1, 1, 1], [0], [0]>} : vector<2x8x8xf32>, vector<2x8x8xf32>, vector<2x8x8xf32> -> vector<2x8x8xf32>
    "tpu.trace_stop"() : () -> ()
    %cst_60 = arith.constant 0.176776692 : f32
    %124 = vector.broadcast %cst_60 : f32 to vector<2x8x8xf32>
    %125 = arith.mulf %123, %124 : vector<2x8x8xf32>
    %cst_61 = arith.constant dense<0xFF800000> : vector<2x8xf32>
    %126 = vector.multi_reduction <maximumf>, %125, %cst_61 [2] : vector<2x8x8xf32> to vector<2x8xf32>
    %127 = vector.shape_cast %126 : vector<2x8xf32> to vector<2x8x1xf32>
    %128 = vector.broadcast %127 : vector<2x8x1xf32> to vector<2x8x8xf32>
    %129 = arith.subf %125, %128 : vector<2x8x8xf32>
    %130 = math.exp %129 : vector<2x8x8xf32>
    %cst_62 = arith.constant dense<0.000000e+00> : vector<2x8xf32>
    %131 = vector.multi_reduction <add>, %130, %cst_62 [2] : vector<2x8x8xf32> to vector<2x8xf32>
    %132 = vector.shape_cast %131 : vector<2x8xf32> to vector<2x8x1xf32>
    %133 = tpu.reciprocal %132 : vector<2x8x1xf32> -> vector<2x8x1xf32>
    %134 = vector.broadcast %133 : vector<2x8x1xf32> to vector<2x8x8xf32>
    %135 = arith.mulf %130, %134 : vector<2x8x8xf32>
    "tpu.trace_start"() <{level = 10 : i32, message = "bqk,bkd->bqd"}> : () -> ()
    %cst_63 = arith.constant dense<0.000000e+00> : vector<2x8x8xf32>
    %136 = tpu.matmul %135, %122, %cst_63 {dimension_numbers = #tpu.dot_dimension_numbers<[2], [1], [1], [2], [0, 0, 0, 1, 1, 2], [0], [0]>} : vector<2x8x8xf32>, vector<2x8x8xf32>, vector<2x8x8xf32> -> vector<2x8x8xf32>
    "tpu.trace_stop"() : () -> ()
    %c0_64 = arith.constant 0 : index
    %c0_65 = arith.constant 0 : index
    %c8_66 = arith.constant 8 : index
    %137 = vector.load %arg13[%c0_64, %c0_65, %c8_66] : memref<2x8x32xf32, #tpu.memory_space<vmem>>, vector<2x8x8xf32>
    tpu.vector_store %arg13[%c0_64, %c0_65, %c8_66], %136 {strides = array<i32>} : memref<2x8x32xf32, #tpu.memory_space<vmem>>, vector<2x8x8xf32>,
    %138 = vector.extract_strided_slice %101 {offsets = [0, 0, 16], sizes = [2, 8, 8], strides = [1, 1, 1]} : vector<2x8x32xf32> to vector<2x8x8xf32>
    %139 = vector.extract_strided_slice %100 {offsets = [0, 0, 16], sizes = [2, 8, 8], strides = [1, 1, 1]} : vector<2x8x64xf32> to vector<2x8x8xf32>
    %140 = vector.extract_strided_slice %100 {offsets = [0, 0, 48], sizes = [2, 8, 8], strides = [1, 1, 1]} : vector<2x8x64xf32> to vector<2x8x8xf32>
    "tpu.trace_start"() <{level = 10 : i32, message = "bqd,bkd->bqk"}> : () -> ()
    %cst_67 = arith.constant dense<0.000000e+00> : vector<2x8x8xf32>
    %141 = tpu.matmul %138, %139, %cst_67 {dimension_numbers = #tpu.dot_dimension_numbers<[2], [2], [1], [1], [0, 0, 0, 1, 1, 1], [0], [0]>} : vector<2x8x8xf32>, vector<2x8x8xf32>, vector<2x8x8xf32> -> vector<2x8x8xf32>
    "tpu.trace_stop"() : () -> ()
    %cst_68 = arith.constant 0.176776692 : f32
    %142 = vector.broadcast %cst_68 : f32 to vector<2x8x8xf32>
    %143 = arith.mulf %141, %142 : vector<2x8x8xf32>
    %cst_69 = arith.constant dense<0xFF800000> : vector<2x8xf32>
    %144 = vector.multi_reduction <maximumf>, %143, %cst_69 [2] : vector<2x8x8xf32> to vector<2x8xf32>
    %145 = vector.shape_cast %144 : vector<2x8xf32> to vector<2x8x1xf32>
    %146 = vector.broadcast %145 : vector<2x8x1xf32> to vector<2x8x8xf32>
    %147 = arith.subf %143, %146 : vector<2x8x8xf32>
    %148 = math.exp %147 : vector<2x8x8xf32>
    %cst_70 = arith.constant dense<0.000000e+00> : vector<2x8xf32>
    %149 = vector.multi_reduction <add>, %148, %cst_70 [2] : vector<2x8x8xf32> to vector<2x8xf32>
    %150 = vector.shape_cast %149 : vector<2x8xf32> to vector<2x8x1xf32>
    %151 = tpu.reciprocal %150 : vector<2x8x1xf32> -> vector<2x8x1xf32>
    %152 = vector.broadcast %151 : vector<2x8x1xf32> to vector<2x8x8xf32>
    %153 = arith.mulf %148, %152 : vector<2x8x8xf32>
    "tpu.trace_start"() <{level = 10 : i32, message = "bqk,bkd->bqd"}> : () -> ()
    %cst_71 = arith.constant dense<0.000000e+00> : vector<2x8x8xf32>
    %154 = tpu.matmul %153, %140, %cst_71 {dimension_numbers = #tpu.dot_dimension_numbers<[2], [1], [1], [2], [0, 0, 0, 1, 1, 2], [0], [0]>} : vector<2x8x8xf32>, vector<2x8x8xf32>, vector<2x8x8xf32> -> vector<2x8x8xf32>
    "tpu.trace_stop"() : () -> ()
    %c0_72 = arith.constant 0 : index
    %c0_73 = arith.constant 0 : index
    %c16_74 = arith.constant 16 : index
    %155 = vector.load %arg13[%c0_72, %c0_73, %c16_74] : memref<2x8x32xf32, #tpu.memory_space<vmem>>, vector<2x8x8xf32>
    tpu.vector_store %arg13[%c0_72, %c0_73, %c16_74], %154 {strides = array<i32>} : memref<2x8x32xf32, #tpu.memory_space<vmem>>, vector<2x8x8xf32>,
    %156 = vector.extract_strided_slice %101 {offsets = [0, 0, 24], sizes = [2, 8, 8], strides = [1, 1, 1]} : vector<2x8x32xf32> to vector<2x8x8xf32>
    %157 = vector.extract_strided_slice %100 {offsets = [0, 0, 24], sizes = [2, 8, 8], strides = [1, 1, 1]} : vector<2x8x64xf32> to vector<2x8x8xf32>
    %158 = vector.extract_strided_slice %100 {offsets = [0, 0, 56], sizes = [2, 8, 8], strides = [1, 1, 1]} : vector<2x8x64xf32> to vector<2x8x8xf32>
    "tpu.trace_start"() <{level = 10 : i32, message = "bqd,bkd->bqk"}> : () -> ()
    %cst_75 = arith.constant dense<0.000000e+00> : vector<2x8x8xf32>
    %159 = tpu.matmul %156, %157, %cst_75 {dimension_numbers = #tpu.dot_dimension_numbers<[2], [2], [1], [1], [0, 0, 0, 1, 1, 1], [0], [0]>} : vector<2x8x8xf32>, vector<2x8x8xf32>, vector<2x8x8xf32> -> vector<2x8x8xf32>
    "tpu.trace_stop"() : () -> ()
    %cst_76 = arith.constant 0.176776692 : f32
    %160 = vector.broadcast %cst_76 : f32 to vector<2x8x8xf32>
    %161 = arith.mulf %159, %160 : vector<2x8x8xf32>
    %cst_77 = arith.constant dense<0xFF800000> : vector<2x8xf32>
    %162 = vector.multi_reduction <maximumf>, %161, %cst_77 [2] : vector<2x8x8xf32> to vector<2x8xf32>
    %163 = vector.shape_cast %162 : vector<2x8xf32> to vector<2x8x1xf32>
    %164 = vector.broadcast %163 : vector<2x8x1xf32> to vector<2x8x8xf32>
    %165 = arith.subf %161, %164 : vector<2x8x8xf32>
    %166 = math.exp %165 : vector<2x8x8xf32>
    %cst_78 = arith.constant dense<0.000000e+00> : vector<2x8xf32>
    %167 = vector.multi_reduction <add>, %166, %cst_78 [2] : vector<2x8x8xf32> to vector<2x8xf32>
    %168 = vector.shape_cast %167 : vector<2x8xf32> to vector<2x8x1xf32>
    %169 = tpu.reciprocal %168 : vector<2x8x1xf32> -> vector<2x8x1xf32>
    %170 = vector.broadcast %169 : vector<2x8x1xf32> to vector<2x8x8xf32>
    %171 = arith.mulf %166, %170 : vector<2x8x8xf32>
    "tpu.trace_start"() <{level = 10 : i32, message = "bqk,bkd->bqd"}> : () -> ()
    %cst_79 = arith.constant dense<0.000000e+00> : vector<2x8x8xf32>
    %172 = tpu.matmul %171, %158, %cst_79 {dimension_numbers = #tpu.dot_dimension_numbers<[2], [1], [1], [2], [0, 0, 0, 1, 1, 2], [0], [0]>} : vector<2x8x8xf32>, vector<2x8x8xf32>, vector<2x8x8xf32> -> vector<2x8x8xf32>
    "tpu.trace_stop"() : () -> ()
    %c0_80 = arith.constant 0 : index
    %c0_81 = arith.constant 0 : index
    %c24_82 = arith.constant 24 : index
    %173 = vector.load %arg13[%c0_80, %c0_81, %c24_82] : memref<2x8x32xf32, #tpu.memory_space<vmem>>, vector<2x8x8xf32>
    tpu.vector_store %arg13[%c0_80, %c0_81, %c24_82], %172 {strides = array<i32>} : memref<2x8x32xf32, #tpu.memory_space<vmem>>, vector<2x8x8xf32>,
    %c0_83 = arith.constant 0 : index
    %c0_84 = arith.constant 0 : index
    %c0_85 = arith.constant 0 : index
    %174 = vector.load %arg13[%c0_83, %c0_84, %c0_85] : memref<2x8x32xf32, #tpu.memory_space<vmem>>, vector<2x8x32xf32>
    %175 = arith.addf %101, %174 : vector<2x8x32xf32>
    %176 = vector.shape_cast %175 : vector<2x8x32xf32> to vector<16x32xf32>
    %c0_86 = arith.constant 0 : index
    %c0_87 = arith.constant 0 : index
    %177 = vector.load %arg9[%c0_86, %c0_87] : memref<32x32xf32, #tpu.memory_space<vmem>>, vector<32x32xf32>
    %cst_88 = arith.constant dense<0.000000e+00> : vector<16x32xf32>
    %178 = tpu.matmul %176, %177, %cst_88 {dimension_numbers = #tpu.dot_dimension_numbers<[1], [0], [0], [1], [0, 0, 1, 1], [], []>} : vector<16x32xf32>, vector<32x32xf32>, vector<16x32xf32> -> vector<16x32xf32>
    %c0_89 = arith.constant 0 : index
    %c0_90 = arith.constant 0 : index
    %179 = vector.load %arg10[%c0_89, %c0_90] : memref<1x32xf32, #tpu.memory_space<vmem>>, vector<1x32xf32>
    %180 = vector.broadcast %179 : vector<1x32xf32> to vector<16x32xf32>
    %181 = arith.addf %178, %180 : vector<16x32xf32>
    %cst_91 = arith.constant 0.000000e+00 : f32
    %182 = vector.broadcast %cst_91 : f32 to vector<16x32xf32>
    %183 = arith.maximumf %181, %182 : vector<16x32xf32>
    %184 = arith.addf %176, %183 : vector<16x32xf32>
    %185 = vector.shape_cast %184 : vector<16x32xf32> to vector<2x8x32xf32>
    %c0_92 = arith.constant 0 : index
    %c0_93 = arith.constant 0 : index
    %c0_94 = arith.constant 0 : index
    %186 = vector.load %arg11[%c0_92, %c0_93, %c0_94] : memref<2x8x32xf32, #tpu.memory_space<vmem>>, vector<2x8x32xf32>
    tpu.vector_store %arg11[%c0_92, %c0_93, %c0_94], %185 {strides = array<i32>} : memref<2x8x32xf32, #tpu.memory_space<vmem>>, vector<2x8x32xf32>,
    return
  }
  func.func @transform_0(%arg0: i32) -> (i32, i32, i32) {
    %c0_i32 = arith.constant 0 : i32
    %c0_i32_0 = arith.constant 0 : i32
    %c0_i32_1 = arith.constant 0 : i32
    return %arg0, %c0_i32, %c0_i32_0 : i32, i32, i32
  }
  func.func @transform_1(%arg0: i32) -> (i32, i32) {
    %c0_i32 = arith.constant 0 : i32
    %c0_i32_0 = arith.constant 0 : i32
    %c0_i32_1 = arith.constant 0 : i32
    return %c0_i32, %c0_i32_0 : i32, i32
  }
  func.func @transform_2(%arg0: i32) -> (i32, i32) {
    %c0_i32 = arith.constant 0 : i32
    %c0_i32_0 = arith.constant 0 : i32
    %c0_i32_1 = arith.constant 0 : i32
    return %c0_i32, %c0_i32_0 : i32, i32
  }
  func.func @transform_3(%arg0: i32) -> (i32, i32) {
    %c0_i32 = arith.constant 0 : i32
    %c0_i32_0 = arith.constant 0 : i32
    %c0_i32_1 = arith.constant 0 : i32
    return %c0_i32, %c0_i32_0 : i32, i32
  }
  func.func @transform_4(%arg0: i32) -> (i32, i32) {
    %c0_i32 = arith.constant 0 : i32
    %c0_i32_0 = arith.constant 0 : i32
    %c0_i32_1 = arith.constant 0 : i32
    return %c0_i32, %c0_i32_0 : i32, i32
  }
  func.func @transform_5(%arg0: i32) -> (i32, i32) {
    %c0_i32 = arith.constant 0 : i32
    %c0_i32_0 = arith.constant 0 : i32
    %c0_i32_1 = arith.constant 0 : i32
    return %c0_i32, %c0_i32_0 : i32, i32
  }
  func.func @transform_6(%arg0: i32) -> (i32, i32) {
    %c0_i32 = arith.constant 0 : i32
    %c0_i32_0 = arith.constant 0 : i32
    %c0_i32_1 = arith.constant 0 : i32
    return %c0_i32, %c0_i32_0 : i32, i32
  }
  func.func @transform_7(%arg0: i32) -> (i32, i32) {
    %c0_i32 = arith.constant 0 : i32
    %c0_i32_0 = arith.constant 0 : i32
    %c0_i32_1 = arith.constant 0 : i32
    return %c0_i32, %c0_i32_0 : i32, i32
  }
  func.func @transform_8(%arg0: i32) -> (i32, i32) {
    %c0_i32 = arith.constant 0 : i32
    %c0_i32_0 = arith.constant 0 : i32
    %c0_i32_1 = arith.constant 0 : i32
    return %c0_i32, %c0_i32_0 : i32, i32
  }
  func.func @transform_9(%arg0: i32) -> (i32, i32) {
    %c0_i32 = arith.constant 0 : i32
    %c0_i32_0 = arith.constant 0 : i32
    %c0_i32_1 = arith.constant 0 : i32
    return %c0_i32, %c0_i32_0 : i32, i32
  }
  func.func @transform_10(%arg0: i32) -> (i32, i32, i32) {
    %c0_i32 = arith.constant 0 : i32
    %c0_i32_0 = arith.constant 0 : i32
    %c0_i32_1 = arith.constant 0 : i32
    return %arg0, %c0_i32, %c0_i32_0 : i32, i32, i32
  }
}

</mosaic_0001>

<bundles_post_ra>
// kernel: tpu_custom_call.1
= control target key start
LH: loop header
LB: loop body
LE: loop exit
PB: predicated region body
PF: predicated region fallthrough
CT: control target
= control target key end

     0   :  { %15 = vsyncpa [#allocation5], 0  ;;  %s4253_s0 = inlined_call_operand.vmem [shape: f32[2,8,4], index: 0, kind: input, shape index: {}]   ;;  %s4254_s1 = inlined_call_operand.hbm [shape: f32[8,32], index: 1, kind: input, shape index: {}]   ;;  %s4255_s2 = inlined_call_operand.vmem [shape: f32[4,96], index: 2, kind: input, shape index: {}]   ;;  %s4256_s3 = inlined_call_operand.vmem [shape: f32[1,96], index: 3, kind: input, shape index: {}]   ;;  %s4257_s4 = inlined_call_operand.vmem [shape: f32[32,32], index: 4, kind: input, shape index: {}]   ;;  %s4258_s5 = inlined_call_operand.vmem [shape: f32[1,32], index: 5, kind: input, shape index: {}]   ;;  %s4259_s6 = inlined_call_operand.hbm [shape: f32[32,64], index: 6, kind: input, shape index: {}]   ;;  %s4260_s7 = inlined_call_operand.vmem [shape: f32[1,64], index: 7, kind: input, shape index: {}]   ;;  %s4261_s8 = inlined_call_operand.hbm [shape: f32[32,32], index: 8, kind: input, shape index: {}]   ;;  %s4262_s9 = inlined_call_operand.vmem [shape: f32[1,32], index: 9, kind: input, shape index: {}]   ;;  %s4263_s10 = inlined_call_operand.hbm [shape: f32[2,8,32], index: 10, kind: output, shape index: {}]  }
   0x1   :  { %16 = vsyncpa [#allocation8], 0 }
   0x2   :  { %17 = vsyncpa [#allocation6], 0  ;;  %s3763_s13 = smov [#allocation7]   ;;  %s3669_s17 = scalar_lea.hbm %s4259_s6, 512 }
   0x3   :  { %s43_s14 = sshll.u32 %s3763_s13, 4  ;;  %p3670_p0 = scmp.ne.s32.totalorder %s4259_s6, %s3669_s17  ;;  %s44_s14 = int_to_ptr.vmem [resolvable:$true] %s43_s14 }
   0x4   :  { %p3673_p1 = scmp.lt.u32.totalorder %s3669_s17, %s4259_s6 }
   0x6   :  { %p3675_p2 = pnand %p3673_p1, %p3670_p0 }
   0x8   :  { %3678 = shalt.err (!%p3675_p2)
}
   0x9   :  { %s3679_s22 = scalar_lea.vmem %s44_s14, 512  ;;  %p3684_p4 = scmp.lt.s32.totalorder %s44_s14, %s44_s14 }
   0xa   :  { %p3680_p3 = scmp.ne.s32.totalorder %s44_s14, %s3679_s22  ;;  %p3685_p5 = scmp.lt.s32.totalorder %s3679_s22, %s3679_s22 }
   0xc   :  { %p3686_p6 = por %p3685_p5, %p3684_p4 }
   0xe   :  { %p3687_p7 = pnand %p3686_p6, %p3680_p3 }
  0x10   :  { %3690 = shalt.err (!%p3687_p7)
}
  0x11   :  { %s3764_s23 = smov 128   ;;  %s3765_s24 = smov 8  }
  0x12   :  { %49 = dma.hbm_to_vmem [thread:$0]  %s4259_s6, 512, %s44_s14, [#allocation8], %s3764_s23, %s3764_s23, %s3765_s24  }
  0x13   :  { %s3766_s27 = smov [#allocation4]   ;;  %s3767_s29 = smov [#allocation9]  }
  0x14   :  { %s26_s28 = sshll.u32 %s3766_s27, 4  ;;  %s57_s30 = sshll.u32 %s3767_s29, 4  ;;  %s27_s28 = int_to_ptr.vmem [resolvable:$true] %s26_s28  ;;  %s58_s30 = int_to_ptr.vmem [resolvable:$true] %s57_s30 }
  0x15   :  { %s3691_s13 = scalar_lea.hbm %s4254_s1, 128 }
  0x16   :  { %p3692_p8 = scmp.ne.s32.totalorder %s4254_s1, %s3691_s13  ;;  %p3695_p9 = scmp.lt.u32.totalorder %s3691_s13, %s4254_s1 }
  0x18   :  { %p3697_p10 = pnand %p3695_p9, %p3692_p8 }
  0x1a   :  { %3700 = shalt.err (!%p3697_p10)
}
  0x1b   :  { %s3701_s6 = scalar_lea.vmem %s27_s28, 128  ;;  %p3706_p12 = scmp.lt.s32.totalorder %s27_s28, %s27_s28 }
  0x1c   :  { %p3702_p11 = scmp.ne.s32.totalorder %s27_s28, %s3701_s6  ;;  %p3707_p13 = scmp.lt.s32.totalorder %s3701_s6, %s3701_s6 }
  0x1e   :  { %p3708_p0 = por %p3707_p13, %p3706_p12 }
  0x20   :  { %p3709_p1 = pnand %p3708_p0, %p3702_p11 }
  0x22   :  { %3712 = shalt.err (!%p3709_p1)
}
  0x23   :  { %29 = dma.hbm_to_vmem [thread:$0]  %s4254_s1, 128, %s27_s28, [#allocation5]  }
  0x24   :  { %s3713_s22 = scalar_lea.hbm %s4261_s8, 512 }
  0x25   :  { %p3714_p2 = scmp.ne.s32.totalorder %s4261_s8, %s3713_s22  ;;  %p3717_p3 = scmp.lt.u32.totalorder %s3713_s22, %s4261_s8 }
  0x27   :  { %p3719_p4 = pnand %p3717_p3, %p3714_p2 }
  0x29   :  { %3722 = shalt.err (!%p3719_p4)
}
  0x2a   :  { %s3723_s11 = scalar_lea.vmem %s58_s30, 512  ;;  %p3728_p6 = scmp.lt.s32.totalorder %s58_s30, %s58_s30 }
  0x2b   :  { %p3724_p5 = scmp.ne.s32.totalorder %s58_s30, %s3723_s11  ;;  %p3729_p7 = scmp.lt.s32.totalorder %s3723_s11, %s3723_s11 }
  0x2d   :  { %p3730_p8 = por %p3729_p7, %p3728_p6 }
  0x2f   :  { %p3731_p9 = pnand %p3730_p8, %p3724_p5 }
  0x31   :  { %3734 = shalt.err (!%p3731_p9)
}
  0x32   :  { %63 = dma.hbm_to_vmem [thread:$0]  %s4261_s8, 512, %s58_s30, [#allocation8], %s3764_s23, %s3764_s23, %s3765_s24  }
  0x33   :  { %3757 = dma.done.wait [#allocation5], 128  }
  0x34   :  { %3758 = vsyncadd [#allocation5], 4294967168 }
  0x35   :  { %3759 = dma.done.wait [#allocation8], 1024  }
  0x36   :  { %3760 = vsyncadd [#allocation8], 4294966272  ;;  %vm92_vm0 = vcmask 1043456   ;;  %vm85_vm1 = vcmask 31744   ;;  %v77_v0 = vld [vmem:[%s4255_s2] sm:$0xf] }
  0x37   :  { %v75_v1 = vld [vmem:[%s4253_s0] sm:$0xff]  ;;  %v76_v2 = vld [vmem:[%s4253_s0 + $0x8] sm:$0xff]  ;;  %3362 = vmatprep.subr.msk.mxu0 %vm92_vm0, %v77_v0  ;;  %v3768_v3 = vmov 0.0   ;;  %vm3769_vm2 = vmmov 0   ;;  %vm172_vm3 = vcmask 64512   ;;  %s3770_s0 = smov 96  }
  0x38   :  { %3364 = vmatprep.mubr.msk.f32.mxu0 %vm85_vm1, %v75_v1  ;;  %3363 = vmatpush3.msk.msra.mxu0 %vm92_vm0, %v77_v0  ;;  %v3216_v4 = vld [vmem:[%s4256_s3] ss:$0 sm:$0xff]  ;;  %v3907_v9 = vld [vmem:[#allocation4] sm:$0xff]  ;;  %s3771_s30 = smov 120   ;;  %s3772_s3 = smov 88   ;;  %vm836_vm4 = vcmask 130112  }
  0x39   :  { %3365 = vmatmul.mubr.msk.f32.vlgmr.msra.gmra.mrb[0].mxu0 %vm85_vm1, %v76_v2  ;;  %3367 = vmatprep.subr.mxu0 %v3768_v3  ;;  %s3773_s6 = smov 112   ;;  %s3774_s14 = smov 80   ;;  %vm1175_vm5 = vcmask 195712   ;;  %vm1514_vm6 = vcmask 261312   ;;  %vm1532_vm7 = vcmask 261120  }
  0x3a   :  { %3377 = vmatprep.subr.mxu1 %v3768_v3  ;;  %3369 = vmatprep.mubr.msk.f32.mxu0 %vm3769_vm2, %v3768_v3  ;;  %s3775_s19 = smov 104   ;;  %s3776_s20 = smov 72  }
  0x3b   :  { %3379 = vmatprep.mubr.msk.f32.mxu1 %vm3769_vm2, %v3768_v3  ;;  %s3777_s21 = smov 16   ;;  %s3778_s12 = smov 24  }
  0x3c   :  { %s3779_s13 = smov 64   ;;  %s3782_s18 = smov 40  }
 0x10c   :  { %v3366_v5 = vpop.f32.mrb[0].mxu0 }
 0x10d   :  { %v3899_v6 = vadd.f32 %v3366_v5, %v3216_v4  ;;  %v162_v7 = vpop.f32.mrb[1].mxu0 }
 0x10e   :  { %v3901_v8 = vadd.f32 %v3216_v4, %v162_v7 }
 0x10f   :  { %422 = vrot.lane.b32.xlu1 %v3899_v6, %s3770_s0 }
 0x110   :  { %3368 = vmatpush3.xpose.msk.msra.mxu0 %vm172_vm3, %v3901_v8 }
 0x111   :  { %3372 = vmatprep.subr.mxu0 %v3768_v3 }
 0x113   :  { %502 = vrot.lane.b32.xlu1 %v3901_v8, %s3771_s30  ;;  %3370 = vmatmul.mubr.msk.f32.vlgmr.msra.gmra.mrb[2].mxu0 %vm172_vm3, %v3907_v9 }
 0x114   :  { %3373 = vmatpush3.xpose.msk.msra.mxu0 %vm172_vm3, %v3899_v6  ;;  %3374 = vmatprep.mubr.msk.f32.mxu0 %vm3769_vm2, %v3768_v3 }
 0x115   :  { %3382 = vmatprep.subr.mxu0 %v3768_v3 }
 0x117   :  { %3375 = vmatmul.mubr.msk.f32.vlgmr.msra.gmra.mrb[4].mxu0 %vm172_vm3, %v3907_v9 }
 0x118   :  { %3384 = vmatprep.mubr.msk.f32.mxu0 %vm3769_vm2, %v3768_v3 }
 0x181   :  { %v423_v10 = vpop.permute.xlu1 %422 }
 0x182   :  { %3383 = vmatpush3.msra.mxu0 %v423_v10 }
 0x183   :  { %3392 = vmatprep.subr.mxu0 %v3768_v3 }
 0x185   :  { %v503_v30 = vpop.permute.xlu1 %502 }
 0x1e6   :  { %v245_v11 = vpop.f32.mrb[2].mxu0 }
 0x1e7   :  { %v322_v12 = vmul.f32 0.17677669, %v245_v11  ;;  %v3371_v13 = vpop.f32.mrb[3].mxu0 }
 0x1e9   :  { %v324_v14 = vsel %vm172_vm3, %v322_v12, -inf }
 0x1ea   :  { %325 = vmax.xlane.f32.xlu0 %v324_v14  ;;  %v318_v15 = vpop.f32.mrb[4].mxu0 }
 0x1eb   :  { %v323_v16 = vmul.f32 0.17677669, %v318_v15  ;;  %v3376_v17 = vpop.f32.mrb[5].mxu0 }
 0x1ed   :  { %v327_v18 = vsel %vm172_vm3, %v323_v16, -inf }
 0x1ee   :  { %328 = vmax.xlane.f32.xlu0 %v327_v18 }
 0x204   :  { %346 = vrot.lane.b32.xlu0 %v3901_v8, %s3770_s0 }
 0x208   :  { %500 = vrot.lane.b32.xlu0 %v3907_v9, %s3771_s30 }
 0x277   :  { %v326_v19 = vpop.xlane.xlu0 %325 }
 0x278   :  { %v330_v20 = vsub.f32 %v322_v12, %v326_v19 }
 0x27a   :  { %v332_v21 = vmul.f32 1.442695, %v330_v20 }
 0x27b   :  { %v329_v22 = vpop.xlane.xlu0 %328 }
 0x27c   :  { %3605 = vpow2.f32 %v332_v21  ;;  %v331_v23 = vsub.f32 %v323_v16, %v329_v22 }
 0x27e   :  { %v334_v24 = vmul.f32 1.442695, %v331_v23 }
 0x27f   :  { %v347_v25 = vpop.permute.xlu0 %346 }
 0x280   :  { %3607 = vpow2.f32 %v334_v24  ;;  %3378 = vmatpush3.msra.mxu1 %v347_v25 }
 0x281   :  { %3387 = vmatprep.subr.mxu1 %v3768_v3 }
 0x283   :  { %v501_v36 = vpop.permute.xlu0 %500 }
 0x286   :  { %v3606_v26 = vpop.eup %3605 }
 0x287   :  { %v336_v27 = vsel %vm172_vm3, %v3606_v26, 0.0 }
 0x288   :  { %337 = vadd.xlane.f32.xlu1 %v336_v27 }
 0x28a   :  { %v3608_v28 = vpop.eup %3607 }
 0x28b   :  { %v339_v29 = vsel %vm172_vm3, %v3608_v28, 0.0 }
 0x28c   :  { %340 = vadd.xlane.f32.xlu1 %v339_v29 }
 0x29d   :  { %578 = vrot.lane.b32.xlu1 %v3899_v6, %s3771_s30 }
 0x315   :  { %v338_v31 = vpop.xlane.xlu1 %337 }
 0x316   :  { %3609 = vrcp.f32 %v338_v31 }
 0x319   :  { %v341_v32 = vpop.xlane.xlu1 %340 }
 0x31a   :  { %3611 = vrcp.f32 %v341_v32 }
 0x31d   :  { %v579_v38 = vpop.permute.xlu1 %578 }
 0x320   :  { %v3610_v33 = vpop.eup %3609 }
 0x321   :  { %v344_v34 = vmul.f32 %v3610_v33, %v3606_v26 }
 0x323   :  { %3380 = vmatmul.mubr.msk.f32.vlgmr.msra.gmra.mrb[0].mxu1 %vm172_vm3, %v344_v34 }
 0x324   :  { %v3612_v35 = vpop.eup %3611  ;;  %3388 = vmatpush3.xpose.msk.msra.mxu1 %vm172_vm3, %v503_v30  ;;  %3389 = vmatprep.mubr.msk.f32.mxu1 %vm3769_vm2, %v3768_v3 }
 0x325   :  { %v345_v37 = vmul.f32 %v3612_v35, %v3608_v28  ;;  %3397 = vmatprep.subr.mxu1 %v3768_v3 }
 0x327   :  { %3385 = vmatmul.mubr.msk.f32.vlgmr.msra.gmra.mrb[6].mxu0 %vm172_vm3, %v345_v37  ;;  %3390 = vmatmul.mubr.msk.f32.vlgmr.msra.gmra.mrb[2].mxu1 %vm172_vm3, %v501_v36 }
 0x328   :  { %3393 = vmatpush3.xpose.msk.msra.mxu0 %vm172_vm3, %v579_v38  ;;  %3394 = vmatprep.mubr.msk.f32.mxu0 %vm3769_vm2, %v3768_v3 }
 0x329   :  { %3402 = vmatprep.subr.mxu0 %v3768_v3  ;;  %3399 = vmatprep.mubr.msk.f32.mxu1 %vm3769_vm2, %v3768_v3 }
 0x32b   :  { %3395 = vmatmul.mubr.msk.f32.vlgmr.msra.gmra.mrb[8].mxu0 %vm172_vm3, %v501_v36 }
 0x32c   :  { %3404 = vmatprep.mubr.msk.f32.mxu0 %vm3769_vm2, %v3768_v3 }
 0x3f6   :  { %v418_v39 = vpop.f32.mrb[0].mxu1 }
 0x3f7   :  { %498 = vst.msk [vmem:[#allocation2] sm:$0xff] %vm172_vm3, %v418_v39  ;;  %v3381_v40 = vpop.f32.mrb[1].mxu1 }
 0x3fa   :  { %v494_v41 = vpop.f32.mrb[6].mxu0  ;;  %v574_v42 = vpop.f32.mrb[2].mxu1 }
 0x3fb   :  { %499 = vst.msk [vmem:[#allocation2 + $0x8] sm:$0xff] %vm172_vm3, %v494_v41  ;;  %v652_v43 = vmul.f32 0.17677669, %v574_v42  ;;  %v3386_v44 = vpop.f32.mrb[7].mxu0  ;;  %v3391_v45 = vpop.f32.mrb[3].mxu1 }
 0x3fd   :  { %v654_v46 = vsel %vm172_vm3, %v652_v43, -inf }
 0x3fe   :  { %655 = vmax.xlane.f32.xlu1 %v654_v46  ;;  %v648_v47 = vpop.f32.mrb[8].mxu0 }
 0x3ff   :  { %v653_v48 = vmul.f32 0.17677669, %v648_v47  ;;  %v3396_v49 = vpop.f32.mrb[9].mxu0 }
 0x401   :  { %v657_v50 = vsel %vm172_vm3, %v653_v48, -inf }
 0x402   :  { %658 = vmax.xlane.f32.xlu0 %v657_v50 }
 0x40f   :  { %676 = vrot.lane.b32.xlu1 %v3901_v8, %s3772_s3 }
 0x413   :  { %841 = vrot.lane.b32.xlu1 %v3901_v8, %s3773_s6 }
 0x417   :  { %917 = vrot.lane.b32.xlu1 %v3899_v6, %s3773_s6 }
 0x41b   :  { %839 = vrot.lane.b32.xlu1 %v3907_v9, %s3773_s6 }
 0x48b   :  { %v656_v51 = vpop.xlane.xlu1 %655 }
 0x48c   :  { %v660_v52 = vsub.f32 %v652_v43, %v656_v51 }
 0x48e   :  { %v662_v53 = vmul.f32 1.442695, %v660_v52 }
 0x48f   :  { %v677_v54 = vpop.permute.xlu1 %676  ;;  %v659_v55 = vpop.xlane.xlu0 %658 }
 0x490   :  { %3613 = vpow2.f32 %v662_v53  ;;  %v661_v56 = vsub.f32 %v653_v48, %v659_v55  ;;  %3398 = vmatpush3.msra.mxu1 %v677_v54 }
 0x491   :  { %3407 = vmatprep.subr.mxu1 %v3768_v3 }
 0x492   :  { %v664_v57 = vmul.f32 1.442695, %v661_v56 }
 0x493   :  { %v842_v0 = vpop.permute.xlu1 %841 }
 0x494   :  { %3615 = vpow2.f32 %v664_v57 }
 0x497   :  { %v918_v4 = vpop.permute.xlu1 %917 }
 0x49a   :  { %v3614_v58 = vpop.eup %3613 }
 0x49b   :  { %v666_v59 = vsel %vm172_vm3, %v3614_v58, 0.0  ;;  %v840_v10 = vpop.permute.xlu1 %839 }
 0x49c   :  { %667 = vadd.xlane.f32.xlu0 %v666_v59 }
 0x49e   :  { %v3616_v60 = vpop.eup %3615 }
 0x49f   :  { %v669_v61 = vsel %vm172_vm3, %v3616_v60, 0.0 }
 0x4a0   :  { %670 = vadd.xlane.f32.xlu0 %v669_v61 }
 0x4b6   :  { %752 = vrot.lane.b32.xlu0 %v3899_v6, %s3772_s3 }
 0x529   :  { %v668_v62 = vpop.xlane.xlu0 %667 }
 0x52a   :  { %3617 = vrcp.f32 %v668_v62 }
 0x52d   :  { %v671_v63 = vpop.xlane.xlu0 %670 }
 0x52e   :  { %3619 = vrcp.f32 %v671_v63 }
 0x531   :  { %v753_v1 = vpop.permute.xlu0 %752 }
 0x532   :  { %3403 = vmatpush3.msra.mxu0 %v753_v1 }
 0x533   :  { %3412 = vmatprep.subr.mxu0 %v3768_v3 }
 0x534   :  { %v3618_v2 = vpop.eup %3617 }
 0x535   :  { %v674_v5 = vmul.f32 %v3618_v2, %v3614_v58 }
 0x537   :  { %3400 = vmatmul.mubr.msk.f32.vlgmr.msra.gmra.mrb[4].mxu1 %vm172_vm3, %v674_v5 }
 0x538   :  { %v3620_v7 = vpop.eup %3619  ;;  %3408 = vmatpush3.xpose.msk.msra.mxu1 %vm172_vm3, %v842_v0  ;;  %3409 = vmatprep.mubr.msk.f32.mxu1 %vm3769_vm2, %v3768_v3 }
 0x539   :  { %v675_v11 = vmul.f32 %v3620_v7, %v3616_v60  ;;  %3417 = vmatprep.subr.mxu1 %v3768_v3 }
 0x53b   :  { %3405 = vmatmul.mubr.msk.f32.vlgmr.msra.gmra.mrb[10].mxu0 %vm172_vm3, %v675_v11  ;;  %3410 = vmatmul.mubr.msk.f32.vlgmr.msra.gmra.mrb[6].mxu1 %vm172_vm3, %v840_v10 }
 0x53c   :  { %3413 = vmatpush3.xpose.msk.msra.mxu0 %vm172_vm3, %v918_v4  ;;  %3414 = vmatprep.mubr.msk.f32.mxu0 %vm3769_vm2, %v3768_v3 }
 0x53d   :  { %3422 = vmatprep.subr.mxu0 %v3768_v3  ;;  %3419 = vmatprep.mubr.msk.f32.mxu1 %vm3769_vm2, %v3768_v3 }
 0x53f   :  { %3415 = vmatmul.mubr.msk.f32.vlgmr.msra.gmra.mrb[12].mxu0 %vm172_vm3, %v840_v10 }
 0x540   :  { %3424 = vmatprep.mubr.msk.f32.mxu0 %vm3769_vm2, %v3768_v3 }
 0x60a   :  { %v3985_v12 = vpop.f32.mrb[4].mxu1 }
 0x60b   :  { %v3401_v13 = vpop.f32.mrb[5].mxu1 }
 0x60e   :  { %v3987_v14 = vpop.f32.mrb[10].mxu0  ;;  %v913_v15 = vpop.f32.mrb[6].mxu1 }
 0x60f   :  { %v991_v16 = vmul.f32 0.17677669, %v913_v15  ;;  %v3406_v17 = vpop.f32.mrb[11].mxu0  ;;  %v3411_v18 = vpop.f32.mrb[7].mxu1 }
 0x611   :  { %v993_v19 = vsel %vm172_vm3, %v991_v16, -inf }
 0x612   :  { %994 = vmax.xlane.f32.xlu0 %v993_v19  ;;  %v987_v20 = vpop.f32.mrb[12].mxu0  ;;  %v1521_v19 = vld [vmem:[%s4257_s4] sm:$0xff] }
 0x613   :  { %v992_v21 = vmul.f32 0.17677669, %v987_v20  ;;  %v3416_v22 = vpop.f32.mrb[13].mxu0  ;;  %v1522_v20 = vld [vmem:[%s4257_s4 + $0x8] sm:$0xff] }
 0x614   :  { %v1523_v22 = vld [vmem:[%s4257_s4 + $0x10] sm:$0xff] }
 0x615   :  { %v996_v23 = vsel %vm172_vm3, %v992_v21, -inf }
 0x616   :  { %997 = vmax.xlane.f32.xlu1 %v996_v23  ;;  %v1524_v23 = vld [vmem:[%s4257_s4 + $0x18] sm:$0xff] }
 0x627   :  { %1091 = vrot.lane.b32.xlu1 %v3899_v6, %s3774_s14 }
 0x628   :  { %1015 = vrot.lane.b32.xlu0 %v3901_v8, %s3774_s14 }
 0x62b   :  { %1180 = vrot.lane.b32.xlu1 %v3901_v8, %s3775_s19 }
 0x62f   :  { %1256 = vrot.lane.b32.xlu1 %v3899_v6, %s3775_s19 }
 0x69f   :  { %v995_v24 = vpop.xlane.xlu0 %994 }
 0x6a0   :  { %v999_v25 = vsub.f32 %v991_v16, %v995_v24  ;;  %v3564_v24 = vpack.c.bf16 %v1524_v23, %v1523_v22 }
 0x6a2   :  { %v1001_v26 = vmul.f32 1.442695, %v999_v25 }
 0x6a3   :  { %v1016_v27 = vpop.permute.xlu0 %1015  ;;  %v998_v28 = vpop.xlane.xlu1 %997 }
 0x6a4   :  { %3621 = vpow2.f32 %v1001_v26  ;;  %v1000_v29 = vsub.f32 %v992_v21, %v998_v28  ;;  %3418 = vmatpush3.msra.mxu1 %v1016_v27  ;;  %v3560_v21 = vpack.c.bf16 %v1522_v20, %v1521_v19 }
 0x6a5   :  { %3427 = vmatprep.subr.mxu1 %v3768_v3 }
 0x6a6   :  { %v1003_v30 = vmul.f32 1.442695, %v1000_v29 }
 0x6a7   :  { %v1092_v31 = vpop.permute.xlu1 %1091 }
 0x6a8   :  { %3623 = vpow2.f32 %v1003_v30  ;;  %3423 = vmatpush3.msra.mxu0 %v1092_v31 }
 0x6a9   :  { %3432 = vmatprep.subr.mxu0 %v3768_v3 }
 0x6ab   :  { %v1181_v39 = vpop.permute.xlu1 %1180 }
 0x6ae   :  { %v3622_v32 = vpop.eup %3621 }
 0x6af   :  { %v1005_v33 = vsel %vm172_vm3, %v3622_v32, 0.0  ;;  %v1257_v44 = vpop.permute.xlu1 %1256 }
 0x6b0   :  { %1006 = vadd.xlane.f32.xlu0 %v1005_v33 }
 0x6b2   :  { %v3624_v34 = vpop.eup %3623 }
 0x6b3   :  { %v1008_v35 = vsel %vm172_vm3, %v3624_v34, 0.0 }
 0x6b4   :  { %1009 = vadd.xlane.f32.xlu0 %v1008_v35  ;;  %v1618_v35 = vld [vmem:[#allocation7] sm:$0xff] }
 0x6ca   :  { %1178 = vrot.lane.b32.xlu0 %v3907_v9, %s3775_s19 }
 0x73d   :  { %v1007_v36 = vpop.xlane.xlu0 %1006 }
 0x73e   :  { %3625 = vrcp.f32 %v1007_v36  ;;  %v1619_v36 = vld [vmem:[#allocation7 + $0x8] sm:$0xff] }
 0x741   :  { %v1010_v37 = vpop.xlane.xlu0 %1009 }
 0x742   :  { %3627 = vrcp.f32 %v1010_v37  ;;  %v3568_v37 = vpack.c.bf16 %v1619_v36, %v1618_v35 }
 0x745   :  { %v1179_v42 = vpop.permute.xlu0 %1178 }
 0x748   :  { %v3626_v38 = vpop.eup %3625 }
 0x749   :  { %v1013_v40 = vmul.f32 %v3626_v38, %v3622_v32  ;;  %v1620_v38 = vld [vmem:[#allocation7 + $0x10] sm:$0xff] }
 0x74b   :  { %3420 = vmatmul.mubr.msk.f32.vlgmr.msra.gmra.mrb[8].mxu1 %vm172_vm3, %v1013_v40 }
 0x74c   :  { %v3628_v41 = vpop.eup %3627  ;;  %3428 = vmatpush3.xpose.msk.msra.mxu1 %vm172_vm3, %v1181_v39  ;;  %3429 = vmatprep.mubr.msk.f32.mxu1 %vm3769_vm2, %v3768_v3  ;;  %v1621_v39 = vld [vmem:[#allocation7 + $0x18] sm:$0xff] }
 0x74d   :  { %v1014_v43 = vmul.f32 %v3628_v41, %v3624_v34  ;;  %3437 = vmatprep.subr.mxu1 %v3768_v3  ;;  %v3572_v40 = vpack.c.bf16 %v1621_v39, %v1620_v38 }
 0x74f   :  { %3425 = vmatmul.mubr.msk.f32.vlgmr.msra.gmra.mrb[14].mxu0 %vm172_vm3, %v1014_v43  ;;  %3430 = vmatmul.mubr.msk.f32.vlgmr.msra.gmra.mrb[10].mxu1 %vm172_vm3, %v1179_v42 }
 0x750   :  { %3433 = vmatpush3.xpose.msk.msra.mxu0 %vm172_vm3, %v1257_v44  ;;  %3434 = vmatprep.mubr.msk.f32.mxu0 %vm3769_vm2, %v3768_v3 }
 0x751   :  { %3442 = vmatprep.subr.mxu0 %v3768_v3  ;;  %3439 = vmatprep.mubr.msk.f32.mxu1 %vm3769_vm2, %v3768_v3 }
 0x753   :  { %3435 = vmatmul.mubr.msk.f32.vlgmr.msra.gmra.mrb[16].mxu0 %vm172_vm3, %v1179_v42 }
 0x754   :  { %3444 = vmatprep.mubr.msk.f32.mxu0 %vm3769_vm2, %v3768_v3 }
 0x81e   :  { %v1087_v45 = vpop.f32.mrb[8].mxu1 }
 0x81f   :  { %v3421_v46 = vpop.f32.mrb[9].mxu1 }
 0x822   :  { %v1163_v47 = vpop.f32.mrb[14].mxu0  ;;  %v1252_v48 = vpop.f32.mrb[10].mxu1 }
 0x823   :  { %v1330_v49 = vmul.f32 0.17677669, %v1252_v48  ;;  %v3426_v50 = vpop.f32.mrb[15].mxu0  ;;  %v3431_v51 = vpop.f32.mrb[11].mxu1 }
 0x825   :  { %v1332_v52 = vsel %vm172_vm3, %v1330_v49, -inf }
 0x826   :  { %1333 = vmax.xlane.f32.xlu1 %v1332_v52  ;;  %v1326_v53 = vpop.f32.mrb[16].mxu0 }
 0x827   :  { %v1331_v54 = vmul.f32 0.17677669, %v1326_v53  ;;  %v3436_v55 = vpop.f32.mrb[17].mxu0 }
 0x829   :  { %v1335_v56 = vsel %vm172_vm3, %v1331_v54, -inf }
 0x82a   :  { %1336 = vmax.xlane.f32.xlu0 %v1335_v56 }
 0x837   :  { %1354 = vrot.lane.b32.xlu1 %v3901_v8, %s3776_s20 }
 0x83b   :  { %830 = vrot.lane.b32.xlu1 %v3985_v12, %s3765_s24 }
 0x83f   :  { %832 = vrot.lane.b32.xlu1 %v3987_v14, %s3765_s24 }
 0x843   :  { %1169 = vrot.lane.b32.xlu1 %v1087_v45, %s3777_s21 }
 0x8b3   :  { %v1334_v57 = vpop.xlane.xlu1 %1333 }
 0x8b4   :  { %v1338_v58 = vsub.f32 %v1330_v49, %v1334_v57  ;;  %v3247_v49 = vld [vmem:[%s4260_s7] ss:$0 sm:$0xff]  ;;  %s3781_s7 = smov 48  }
 0x8b6   :  { %v1340_v59 = vmul.f32 1.442695, %v1338_v58 }
 0x8b7   :  { %v1355_v60 = vpop.permute.xlu1 %1354  ;;  %v1337_v61 = vpop.xlane.xlu0 %1336 }
 0x8b8   :  { %3629 = vpow2.f32 %v1340_v59  ;;  %v1339_v62 = vsub.f32 %v1331_v54, %v1337_v61  ;;  %3438 = vmatpush3.msra.mxu1 %v1355_v60 }
 0x8b9   :  { %3561 = vmatprep.subr.bf16.mxu1 %v3560_v21 }
 0x8ba   :  { %v1342_v63 = vmul.f32 1.442695, %v1339_v62 }
 0x8bb   :  { %v831_v0 = vpop.permute.xlu1 %830 }
 0x8bc   :  { %3631 = vpow2.f32 %v1342_v63  ;;  %837 = vst.msk [vmem:[#allocation2] sm:$0xff] %vm836_vm4, %v831_v0 }
 0x8bf   :  { %v833_v1 = vpop.permute.xlu1 %832 }
 0x8c0   :  { %838 = vst.msk [vmem:[#allocation2 + $0x8] sm:$0xff] %vm836_vm4, %v833_v1 }
 0x8c2   :  { %v3630_v2 = vpop.eup %3629 }
 0x8c3   :  { %v1170_v4 = vpop.permute.xlu1 %1169  ;;  %v1344_v5 = vsel %vm172_vm3, %v3630_v2, 0.0 }
 0x8c4   :  { %1176 = vst.msk [vmem:[#allocation2] sm:$0xff] %vm1175_vm5, %v1170_v4  ;;  %1345 = vadd.xlane.f32.xlu0 %v1344_v5 }
 0x8c6   :  { %v3632_v7 = vpop.eup %3631 }
 0x8c7   :  { %v1347_v10 = vsel %vm172_vm3, %v3632_v7, 0.0 }
 0x8c8   :  { %1348 = vadd.xlane.f32.xlu0 %v1347_v10 }
 0x8de   :  { %1430 = vrot.lane.b32.xlu0 %v3899_v6, %s3776_s20 }
 0x8e2   :  { %1171 = vrot.lane.b32.xlu0 %v1163_v47, %s3777_s21 }
 0x951   :  { %v1346_v11 = vpop.xlane.xlu0 %1345 }
 0x952   :  { %3633 = vrcp.f32 %v1346_v11 }
 0x955   :  { %v1349_v12 = vpop.xlane.xlu0 %1348 }
 0x956   :  { %3635 = vrcp.f32 %v1349_v12 }
 0x959   :  { %v1431_v13 = vpop.permute.xlu0 %1430 }
 0x95a   :  { %3443 = vmatpush3.msra.mxu0 %v1431_v13 }
 0x95b   :  { %3569 = vmatprep.subr.bf16.mxu0 %v3568_v37 }
 0x95c   :  { %v3634_v14 = vpop.eup %3633 }
 0x95d   :  { %v1352_v15 = vmul.f32 %v3634_v14, %v3630_v2  ;;  %v1172_v16 = vpop.permute.xlu0 %1171 }
 0x95e   :  { %1177 = vst.msk [vmem:[#allocation2 + $0x8] sm:$0xff] %vm1175_vm5, %v1172_v16 }
 0x95f   :  { %3440 = vmatmul.mubr.msk.f32.vlgmr.msra.gmra.mrb[12].mxu1 %vm172_vm3, %v1352_v15 }
 0x960   :  { %v3636_v17 = vpop.eup %3635  ;;  %3563 = vmatpush3.bf16.msra.mxu1 %v3560_v21 }
 0x961   :  { %v1353_v18 = vmul.f32 %v3636_v17, %v3632_v7  ;;  %3565 = vmatprep.subr.bf16.mxu1 %v3564_v24 }
 0x963   :  { %3445 = vmatmul.mubr.msk.f32.vlgmr.msra.gmra.mrb[18].mxu0 %vm172_vm3, %v1353_v18 }
 0x964   :  { %3567 = vmatpush3.bf16.msra.mxu1 %v3564_v24  ;;  %3571 = vmatpush3.bf16.msra.mxu0 %v3568_v37 }
 0x965   :  { %3469 = vmatprep.subr.mxu1 %v3768_v3  ;;  %3573 = vmatprep.subr.bf16.mxu0 %v3572_v40 }
 0x968   :  { %3575 = vmatpush3.bf16.msra.mxu0 %v3572_v40 }
 0x969   :  { %3474 = vmatprep.subr.mxu0 %v3768_v3 }
 0xa32   :  { %v1426_v25 = vpop.f32.mrb[12].mxu1 }
 0xa33   :  { %1508 = vrot.lane.b32.xlu1 %v1426_v25, %s3778_s12  ;;  %v3441_v26 = vpop.f32.mrb[13].mxu1 }
 0xa36   :  { %v1502_v27 = vpop.f32.mrb[18].mxu0 }
 0xa37   :  { %1710 = vrot.lane.b32.xlu1 %v3901_v8, %s3779_s13  ;;  %1510 = vrot.lane.b32.xlu0 %v1502_v27, %s3778_s12  ;;  %v3446_v28 = vpop.f32.mrb[19].mxu0 }
 0xa3b   :  { %1787 = vrot.lane.b32.xlu0 %v3899_v6, %s3779_s13 }
 0xaa5   :  { %v1509_v29 = vpop.permute.xlu1 %1508 }
 0xaa6   :  { %1515 = vst.msk [vmem:[#allocation2] sm:$0xff] %vm1514_vm6, %v1509_v29 }
 0xaa9   :  { %v1511_v30 = vpop.permute.xlu0 %1510  ;;  %v1711_v55 = vpop.permute.xlu1 %1710 }
 0xaaa   :  { %1516 = vst.msk [vmem:[#allocation2 + $0x8] sm:$0xff] %vm1514_vm6, %v1511_v30 }
 0xaad   :  { %v1517_v31 = vld [vmem:[#allocation2] sm:$0xff]  ;;  %v1788_v54 = vpop.permute.xlu0 %1787 }
 0xaae   :  { %v1519_v32 = vadd.f32 %v1517_v31, %v3907_v9 }
 0xab0   :  { %3455 = vmatprep.mubr.msk.f32.mxu1 %vm1532_vm7, %v1519_v32 }
 0xab1   :  { %v1518_v33 = vld [vmem:[#allocation2 + $0x8] sm:$0xff] }
 0xab2   :  { %v1520_v34 = vadd.f32 %v1518_v33, %v3907_v9  ;;  %v3244_v9 = vld [vmem:[%s4258_s5] ss:$0 sm:$0xff]  ;;  %s3780_s5 = smov 56  }
 0xab4   :  { %3456 = vmatmul.mubr.msk.f32.vlgmr.msra.gmra.mrb[14].mxu1 %vm1532_vm7, %v1520_v34 }
 0xab5   :  { %3471 = vmatprep.mubr.msk.f32.mxu1 %vm3769_vm2, %v3768_v3 }
 0xb87   :  { %v3457_v41 = vpop.f32.mrb[14].mxu1 }
 0xb88   :  { %v1611_v42 = vadd.f32 %v3457_v41, %v3244_v9  ;;  %v1605_v43 = vpop.f32.mrb[15].mxu1 }
 0xb89   :  { %v1606_v44 = vadd.f32 %v3244_v9, %v1605_v43 }
 0xb8a   :  { %v1615_v45 = vmax.f32 %v1611_v42, 0.0 }
 0xb8b   :  { %v1614_v46 = vmax.f32 %v1606_v44, 0.0 }
 0xb8c   :  { %v1617_v48 = vadd.f32 %v1615_v45, %v1520_v34 }
 0xb8d   :  { %v1616_v47 = vadd.f32 %v1614_v46, %v1519_v32 }
 0xb8f   :  { %3466 = vmatprep.mubr.msk.f32.mxu0 %vm1532_vm7, %v1616_v47 }
 0xb90   :  { %3467 = vmatmul.mubr.msk.f32.vlgmr.msra.gmra.mrb[20].mxu0 %vm1532_vm7, %v1617_v48 }
 0xb91   :  { %3476 = vmatprep.mubr.msk.f32.mxu0 %vm3769_vm2, %v3768_v3 }
 0xc63   :  { %v3468_v50 = vpop.f32.mrb[20].mxu0 }
 0xc64   :  { %v4079_v51 = vadd.f32 %v3468_v50, %v3247_v49  ;;  %v1701_v52 = vpop.f32.mrb[21].mxu0 }
 0xc65   :  { %v4081_v53 = vadd.f32 %v3247_v49, %v1701_v52 }
 0xc66   :  { %3475 = vmatpush3.xpose.msk.msra.mxu0 %vm172_vm3, %v4079_v51 }
 0xc67   :  { %3470 = vmatpush3.xpose.msk.msra.mxu1 %vm172_vm3, %v4081_v53  ;;  %3484 = vmatprep.subr.mxu0 %v3768_v3 }
 0xc68   :  { %3479 = vmatprep.subr.mxu1 %v3768_v3 }
 0xc69   :  { %3477 = vmatmul.mubr.msk.f32.vlgmr.msra.gmra.mrb[22].mxu0 %vm172_vm3, %v1788_v54 }
 0xc6a   :  { %3472 = vmatmul.mubr.msk.f32.vlgmr.msra.gmra.mrb[16].mxu1 %vm172_vm3, %v1711_v55  ;;  %3486 = vmatprep.mubr.msk.f32.mxu0 %vm3769_vm2, %v3768_v3 }
 0xc6b   :  { %3481 = vmatprep.mubr.msk.f32.mxu1 %vm3769_vm2, %v3768_v3 }
 0xd3c   :  { %v1860_v56 = vpop.f32.mrb[22].mxu0 }
 0xd3d   :  { %v1865_v57 = vmul.f32 0.17677669, %v1860_v56  ;;  %v1783_v58 = vpop.f32.mrb[16].mxu1  ;;  %v3478_v59 = vpop.f32.mrb[23].mxu0 }
 0xd3e   :  { %v1864_v60 = vmul.f32 0.17677669, %v1783_v58  ;;  %v3473_v61 = vpop.f32.mrb[17].mxu1 }
 0xd3f   :  { %v1869_v62 = vsel %vm172_vm3, %v1865_v57, -inf }
 0xd40   :  { %1870 = vmax.xlane.f32.xlu0 %v1869_v62  ;;  %v1866_v63 = vsel %vm172_vm3, %v1864_v60, -inf }
 0xd41   :  { %1867 = vmax.xlane.f32.xlu1 %v1866_v63 }
 0xd52   :  { %1888 = vrot.lane.b32.xlu1 %v4081_v53, %s3770_s0 }
 0xd56   :  { %2044 = vrot.lane.b32.xlu1 %v4081_v53, %s3771_s30 }
 0xd5a   :  { %2122 = vrot.lane.b32.xlu1 %v4079_v51, %s3771_s30 }
 0xd5e   :  { %2042 = vrot.lane.b32.xlu1 %v3901_v8, %s3780_s5 }
 0xdcd   :  { %v1871_v0 = vpop.xlane.xlu0 %1870 }
 0xdce   :  { %v1873_v1 = vsub.f32 %v1865_v57, %v1871_v0  ;;  %v1868_v2 = vpop.xlane.xlu1 %1867 }
 0xdcf   :  { %v1872_v4 = vsub.f32 %v1864_v60, %v1868_v2 }
 0xdd0   :  { %v1876_v5 = vmul.f32 1.442695, %v1873_v1 }
 0xdd1   :  { %v1874_v7 = vmul.f32 1.442695, %v1872_v4 }
 0xdd2   :  { %3637 = vpow2.f32 %v1876_v5  ;;  %v1889_v10 = vpop.permute.xlu1 %1888 }
 0xdd3   :  { %3480 = vmatpush3.msra.mxu1 %v1889_v10  ;;  %3639 = vpow2.f32 %v1874_v7 }
 0xdd4   :  { %3489 = vmatprep.subr.mxu1 %v3768_v3 }
 0xdd6   :  { %v2045_v18 = vpop.permute.xlu1 %2044 }
 0xdda   :  { %v2123_v22 = vpop.permute.xlu1 %2122 }
 0xddc   :  { %v3638_v11 = vpop.eup %3637 }
 0xddd   :  { %v1881_v12 = vsel %vm172_vm3, %v3638_v11, 0.0  ;;  %v3640_v13 = vpop.eup %3639 }
 0xdde   :  { %1882 = vadd.xlane.f32.xlu0 %v1881_v12  ;;  %v1878_v14 = vsel %vm172_vm3, %v3640_v13, 0.0  ;;  %v2043_v25 = vpop.permute.xlu1 %2042 }
 0xde2   :  { %1879 = vadd.xlane.f32.xlu0 %v1878_v14 }
 0xdf8   :  { %1964 = vrot.lane.b32.xlu0 %v4079_v51, %s3770_s0  ;;  %s3783_s0 = smov [#allocation10]  }
 0xdfc   :  { %2120 = vrot.lane.b32.xlu0 %v3899_v6, %s3780_s5 }
 0xe6b   :  { %v1883_v15 = vpop.xlane.xlu0 %1882 }
 0xe6c   :  { %3641 = vrcp.f32 %v1883_v15 }
 0xe6f   :  { %v1880_v16 = vpop.xlane.xlu0 %1879 }
 0xe70   :  { %3643 = vrcp.f32 %v1880_v16 }
 0xe73   :  { %v1965_v17 = vpop.permute.xlu0 %1964 }
 0xe74   :  { %3485 = vmatpush3.msra.mxu0 %v1965_v17 }
 0xe75   :  { %3494 = vmatprep.subr.mxu0 %v3768_v3 }
 0xe76   :  { %v3642_v19 = vpop.eup %3641 }
 0xe77   :  { %v1887_v20 = vmul.f32 %v3642_v19, %v3638_v11  ;;  %v2121_v24 = vpop.permute.xlu0 %2120 }
 0xe79   :  { %3487 = vmatmul.mubr.msk.f32.vlgmr.msra.gmra.mrb[24].mxu0 %vm172_vm3, %v1887_v20 }
 0xe7a   :  { %v3644_v21 = vpop.eup %3643  ;;  %3496 = vmatprep.mubr.msk.f32.mxu0 %vm3769_vm2, %v3768_v3 }
 0xe7b   :  { %v1886_v23 = vmul.f32 %v3644_v21, %v3640_v13  ;;  %3495 = vmatpush3.xpose.msk.msra.mxu0 %vm172_vm3, %v2123_v22 }
 0xe7c   :  { %3504 = vmatprep.subr.mxu0 %v3768_v3 }
 0xe7d   :  { %3482 = vmatmul.mubr.msk.f32.vlgmr.msra.gmra.mrb[18].mxu1 %vm172_vm3, %v1886_v23 }
 0xe7e   :  { %3490 = vmatpush3.xpose.msk.msra.mxu1 %vm172_vm3, %v2045_v18  ;;  %3497 = vmatmul.mubr.msk.f32.vlgmr.msra.gmra.mrb[26].mxu0 %vm172_vm3, %v2121_v24 }
 0xe7f   :  { %3491 = vmatprep.mubr.msk.f32.mxu1 %vm3769_vm2, %v3768_v3  ;;  %3499 = vmatprep.subr.mxu1 %v3768_v3 }
 0xe80   :  { %3506 = vmatprep.mubr.msk.f32.mxu0 %vm3769_vm2, %v3768_v3 }
 0xe81   :  { %3492 = vmatmul.mubr.msk.f32.vlgmr.msra.gmra.mrb[20].mxu1 %vm172_vm3, %v2043_v25 }
 0xe82   :  { %3501 = vmatprep.mubr.msk.f32.mxu1 %vm3769_vm2, %v3768_v3 }
 0xf4c   :  { %v2036_v26 = vpop.f32.mrb[24].mxu0 }
 0xf4d   :  { %2041 = vst.msk [vmem:[#allocation3 + $0x8] sm:$0xff] %vm172_vm3, %v2036_v26  ;;  %v3488_v27 = vpop.f32.mrb[25].mxu0 }
 0xf50   :  { %v1960_v28 = vpop.f32.mrb[18].mxu1 }
 0xf51   :  { %2040 = vst.msk [vmem:[#allocation3] sm:$0xff] %vm172_vm3, %v1960_v28  ;;  %v3483_v29 = vpop.f32.mrb[19].mxu1  ;;  %v2194_v30 = vpop.f32.mrb[26].mxu0 }
 0xf52   :  { %v2199_v31 = vmul.f32 0.17677669, %v2194_v30  ;;  %v3498_v32 = vpop.f32.mrb[27].mxu0 }
 0xf54   :  { %v2116_v33 = vpop.f32.mrb[20].mxu1  ;;  %v2203_v34 = vsel %vm172_vm3, %v2199_v31, -inf }
 0xf55   :  { %v2198_v35 = vmul.f32 0.17677669, %v2116_v33  ;;  %2204 = vmax.xlane.f32.xlu0 %v2203_v34  ;;  %v3493_v36 = vpop.f32.mrb[21].mxu1 }
 0xf57   :  { %v2200_v37 = vsel %vm172_vm3, %v2198_v35, -inf }
 0xf58   :  { %2201 = vmax.xlane.f32.xlu1 %v2200_v37 }
 0xf69   :  { %2222 = vrot.lane.b32.xlu1 %v4081_v53, %s3772_s3 }
 0xf6d   :  { %2386 = vrot.lane.b32.xlu1 %v4081_v53, %s3773_s6 }
 0xf71   :  { %2464 = vrot.lane.b32.xlu1 %v4079_v51, %s3773_s6 }
 0xf75   :  { %2384 = vrot.lane.b32.xlu1 %v3901_v8, %s3781_s7 }
 0xfe2   :  { %v2205_v38 = vpop.xlane.xlu0 %2204 }
 0xfe3   :  { %v2207_v39 = vsub.f32 %v2199_v31, %v2205_v38 }
 0xfe5   :  { %v2210_v40 = vmul.f32 1.442695, %v2207_v39  ;;  %v2202_v9 = vpop.xlane.xlu1 %2201 }
 0xfe6   :  { %v2206_v41 = vsub.f32 %v2198_v35, %v2202_v9 }
 0xfe7   :  { %3645 = vpow2.f32 %v2210_v40 }
 0xfe8   :  { %v2208_v42 = vmul.f32 1.442695, %v2206_v41 }
 0xfe9   :  { %v2223_v43 = vpop.permute.xlu1 %2222 }
 0xfea   :  { %3647 = vpow2.f32 %v2208_v42  ;;  %3500 = vmatpush3.msra.mxu1 %v2223_v43 }
 0xfeb   :  { %3509 = vmatprep.subr.mxu1 %v3768_v3 }
 0xfed   :  { %v2387_v52 = vpop.permute.xlu1 %2386 }
 0xff1   :  { %v3646_v44 = vpop.eup %3645  ;;  %v2465_v57 = vpop.permute.xlu1 %2464 }
 0xff2   :  { %v2215_v45 = vsel %vm172_vm3, %v3646_v44, 0.0 }
 0xff3   :  { %2216 = vadd.xlane.f32.xlu0 %v2215_v45 }
 0xff4   :  { %v3648_v46 = vpop.eup %3647 }
 0xff5   :  { %v2212_v47 = vsel %vm172_vm3, %v3648_v46, 0.0  ;;  %v2385_v60 = vpop.permute.xlu1 %2384 }
 0xff7   :  { %2213 = vadd.xlane.f32.xlu0 %v2212_v47 }
0x100d   :  { %2298 = vrot.lane.b32.xlu0 %v4079_v51, %s3772_s3 }
0x1011   :  { %2462 = vrot.lane.b32.xlu0 %v3899_v6, %s3781_s7 }
0x1080   :  { %v2217_v48 = vpop.xlane.xlu0 %2216 }
0x1081   :  { %3649 = vrcp.f32 %v2217_v48 }
0x1084   :  { %v2214_v49 = vpop.xlane.xlu0 %2213 }
0x1085   :  { %3651 = vrcp.f32 %v2214_v49 }
0x1088   :  { %v2299_v50 = vpop.permute.xlu0 %2298 }
0x1089   :  { %3505 = vmatpush3.msra.mxu0 %v2299_v50 }
0x108a   :  { %3514 = vmatprep.subr.mxu0 %v3768_v3 }
0x108b   :  { %v3650_v54 = vpop.eup %3649 }
0x108c   :  { %v2221_v55 = vmul.f32 %v3650_v54, %v3646_v44  ;;  %v2463_v59 = vpop.permute.xlu0 %2462 }
0x108e   :  { %3507 = vmatmul.mubr.msk.f32.vlgmr.msra.gmra.mrb[28].mxu0 %vm172_vm3, %v2221_v55 }
0x108f   :  { %v3652_v56 = vpop.eup %3651  ;;  %3516 = vmatprep.mubr.msk.f32.mxu0 %vm3769_vm2, %v3768_v3 }
0x1090   :  { %v2220_v58 = vmul.f32 %v3652_v56, %v3648_v46  ;;  %3515 = vmatpush3.xpose.msk.msra.mxu0 %vm172_vm3, %v2465_v57 }
0x1091   :  { %3524 = vmatprep.subr.mxu0 %v3768_v3 }
0x1092   :  { %3502 = vmatmul.mubr.msk.f32.vlgmr.msra.gmra.mrb[22].mxu1 %vm172_vm3, %v2220_v58 }
0x1093   :  { %3510 = vmatpush3.xpose.msk.msra.mxu1 %vm172_vm3, %v2387_v52  ;;  %3517 = vmatmul.mubr.msk.f32.vlgmr.msra.gmra.mrb[30].mxu0 %vm172_vm3, %v2463_v59 }
0x1094   :  { %3511 = vmatprep.mubr.msk.f32.mxu1 %vm3769_vm2, %v3768_v3  ;;  %3519 = vmatprep.subr.mxu1 %v3768_v3 }
0x1095   :  { %3526 = vmatprep.mubr.msk.f32.mxu0 %vm3769_vm2, %v3768_v3 }
0x1096   :  { %3512 = vmatmul.mubr.msk.f32.vlgmr.msra.gmra.mrb[24].mxu1 %vm172_vm3, %v2385_v60 }
0x1097   :  { %3521 = vmatprep.mubr.msk.f32.mxu1 %vm3769_vm2, %v3768_v3 }
0x1161   :  { %v4161_v61 = vpop.f32.mrb[28].mxu0 }
0x1162   :  { %v3508_v62 = vpop.f32.mrb[29].mxu0 }
0x1165   :  { %v4163_v63 = vpop.f32.mrb[22].mxu1 }
0x1166   :  { %v3503_v0 = vpop.f32.mrb[23].mxu1  ;;  %v2536_v1 = vpop.f32.mrb[30].mxu0 }
0x1167   :  { %v2541_v2 = vmul.f32 0.17677669, %v2536_v1  ;;  %v3518_v4 = vpop.f32.mrb[31].mxu0 }
0x1169   :  { %v2458_v5 = vpop.f32.mrb[24].mxu1  ;;  %v2545_v7 = vsel %vm172_vm3, %v2541_v2, -inf }
0x116a   :  { %v2540_v10 = vmul.f32 0.17677669, %v2458_v5  ;;  %2546 = vmax.xlane.f32.xlu0 %v2545_v7  ;;  %v3513_v11 = vpop.f32.mrb[25].mxu1 }
0x116c   :  { %v2542_v12 = vsel %vm172_vm3, %v2540_v10, -inf }
0x116d   :  { %2543 = vmax.xlane.f32.xlu1 %v2542_v12  ;;  %v3080_v12 = vld [vmem:[#allocation9] sm:$0xff] }
0x117e   :  { %2564 = vrot.lane.b32.xlu1 %v4081_v53, %s3774_s14 }
0x1182   :  { %2728 = vrot.lane.b32.xlu1 %v4081_v53, %s3775_s19 }
0x1186   :  { %2806 = vrot.lane.b32.xlu1 %v4079_v51, %s3775_s19 }
0x118a   :  { %2726 = vrot.lane.b32.xlu1 %v3901_v8, %s3782_s18 }
0x11f7   :  { %v2547_v13 = vpop.xlane.xlu0 %2546 }
0x11f8   :  { %v2549_v14 = vsub.f32 %v2541_v2, %v2547_v13  ;;  %v3081_v13 = vld [vmem:[#allocation9 + $0x8] sm:$0xff] }
0x11fa   :  { %v2552_v15 = vmul.f32 1.442695, %v2549_v14  ;;  %v2544_v16 = vpop.xlane.xlu1 %2543  ;;  %v3576_v14 = vpack.c.bf16 %v3081_v13, %v3080_v12 }
0x11fb   :  { %v2548_v17 = vsub.f32 %v2540_v10, %v2544_v16 }
0x11fc   :  { %3653 = vpow2.f32 %v2552_v15 }
0x11fd   :  { %v2550_v18 = vmul.f32 1.442695, %v2548_v17 }
0x11fe   :  { %v2565_v19 = vpop.permute.xlu1 %2564 }
0x11ff   :  { %3655 = vpow2.f32 %v2550_v18  ;;  %3520 = vmatpush3.msra.mxu1 %v2565_v19  ;;  %v3082_v18 = vld [vmem:[#allocation9 + $0x10] sm:$0xff]  ;;  %v3083_v19 = vld [vmem:[#allocation9 + $0x18] sm:$0xff] }
0x1200   :  { %3529 = vmatprep.subr.mxu1 %v3768_v3 }
0x1202   :  { %v2729_v27 = vpop.permute.xlu1 %2728 }
0x1206   :  { %v3654_v20 = vpop.eup %3653  ;;  %v2807_v31 = vpop.permute.xlu1 %2806 }
0x1207   :  { %v2557_v21 = vsel %vm172_vm3, %v3654_v20, 0.0 }
0x1208   :  { %2558 = vadd.xlane.f32.xlu0 %v2557_v21 }
0x1209   :  { %v3656_v22 = vpop.eup %3655 }
0x120a   :  { %v2554_v23 = vsel %vm172_vm3, %v3656_v22, 0.0  ;;  %v2727_v34 = vpop.permute.xlu1 %2726 }
0x120c   :  { %2555 = vadd.xlane.f32.xlu0 %v2554_v23 }
0x1222   :  { %2640 = vrot.lane.b32.xlu0 %v4079_v51, %s3774_s14 }
0x1226   :  { %2804 = vrot.lane.b32.xlu0 %v3899_v6, %s3782_s18 }
0x1295   :  { %v2559_v24 = vpop.xlane.xlu0 %2558 }
0x1296   :  { %3657 = vrcp.f32 %v2559_v24 }
0x1299   :  { %v2556_v25 = vpop.xlane.xlu0 %2555 }
0x129a   :  { %3659 = vrcp.f32 %v2556_v25 }
0x129d   :  { %v2641_v26 = vpop.permute.xlu0 %2640 }
0x129e   :  { %3525 = vmatpush3.msra.mxu0 %v2641_v26 }
0x129f   :  { %3534 = vmatprep.subr.mxu0 %v3768_v3 }
0x12a0   :  { %v3658_v28 = vpop.eup %3657 }
0x12a1   :  { %v2563_v29 = vmul.f32 %v3658_v28, %v3654_v20  ;;  %v2805_v33 = vpop.permute.xlu0 %2804  ;;  %v3580_v20 = vpack.c.bf16 %v3083_v19, %v3082_v18 }
0x12a3   :  { %3527 = vmatmul.mubr.msk.f32.vlgmr.msra.gmra.mrb[32].mxu0 %vm172_vm3, %v2563_v29 }
0x12a4   :  { %v3660_v30 = vpop.eup %3659  ;;  %3536 = vmatprep.mubr.msk.f32.mxu0 %vm3769_vm2, %v3768_v3 }
0x12a5   :  { %v2562_v32 = vmul.f32 %v3660_v30, %v3656_v22  ;;  %3535 = vmatpush3.xpose.msk.msra.mxu0 %vm172_vm3, %v2807_v31 }
0x12a6   :  { %3544 = vmatprep.subr.mxu0 %v3768_v3 }
0x12a7   :  { %3522 = vmatmul.mubr.msk.f32.vlgmr.msra.gmra.mrb[26].mxu1 %vm172_vm3, %v2562_v32 }
0x12a8   :  { %3530 = vmatpush3.xpose.msk.msra.mxu1 %vm172_vm3, %v2729_v27  ;;  %3537 = vmatmul.mubr.msk.f32.vlgmr.msra.gmra.mrb[34].mxu0 %vm172_vm3, %v2805_v33  ;;  %v3274_v27 = vld [vmem:[%s4262_s9] ss:$0 sm:$0xff]  ;;  %s3203_s9 = sshll.u32 %s3783_s0, 4  ;;  %s3204_s9 = int_to_ptr.vmem [resolvable:$true] %s3203_s9 }
0x12a9   :  { %3531 = vmatprep.mubr.msk.f32.mxu1 %vm3769_vm2, %v3768_v3  ;;  %3539 = vmatprep.subr.mxu1 %v3768_v3  ;;  %s3735_s30 = scalar_lea.vmem %s3204_s9, 256  ;;  %p3740_p11 = scmp.lt.s32.totalorder %s3204_s9, %s3204_s9 }
0x12aa   :  { %3546 = vmatprep.mubr.msk.f32.mxu0 %vm3769_vm2, %v3768_v3  ;;  %p3736_p10 = scmp.ne.s32.totalorder %s3204_s9, %s3735_s30  ;;  %p3741_p12 = scmp.lt.s32.totalorder %s3735_s30, %s3735_s30 }
0x12ab   :  { %3532 = vmatmul.mubr.msk.f32.vlgmr.msra.gmra.mrb[28].mxu1 %vm172_vm3, %v2727_v34 }
0x12ac   :  { %3541 = vmatprep.mubr.msk.f32.mxu1 %vm3769_vm2, %v3768_v3  ;;  %p3742_p13 = por %p3741_p12, %p3740_p11 }
0x12ae   :  { %p3743_p0 = pnand %p3742_p13, %p3736_p10 }
0x1376   :  { %v2712_v35 = vpop.f32.mrb[32].mxu0 }
0x1377   :  { %v3528_v36 = vpop.f32.mrb[33].mxu0 }
0x137a   :  { %v2636_v37 = vpop.f32.mrb[26].mxu1 }
0x137b   :  { %v3523_v38 = vpop.f32.mrb[27].mxu1  ;;  %v2878_v39 = vpop.f32.mrb[34].mxu0 }
0x137c   :  { %v2883_v40 = vmul.f32 0.17677669, %v2878_v39  ;;  %v3538_v9 = vpop.f32.mrb[35].mxu0 }
0x137e   :  { %v2800_v41 = vpop.f32.mrb[28].mxu1  ;;  %v2887_v42 = vsel %vm172_vm3, %v2883_v40, -inf }
0x137f   :  { %v2882_v43 = vmul.f32 0.17677669, %v2800_v41  ;;  %2888 = vmax.xlane.f32.xlu0 %v2887_v42  ;;  %v3533_v44 = vpop.f32.mrb[29].mxu1 }
0x1381   :  { %v2884_v45 = vsel %vm172_vm3, %v2882_v43, -inf }
0x1382   :  { %2885 = vmax.xlane.f32.xlu1 %v2884_v45 }
0x1393   :  { %2906 = vrot.lane.b32.xlu1 %v4081_v53, %s3776_s20 }
0x1397   :  { %2376 = vrot.lane.b32.xlu1 %v4163_v63, %s3765_s24 }
0x139b   :  { %2378 = vrot.lane.b32.xlu1 %v4161_v61, %s3765_s24 }
0x139f   :  { %2718 = vrot.lane.b32.xlu1 %v2636_v37, %s3777_s21 }
0x140c   :  { %v2889_v3 = vpop.xlane.xlu0 %2888 }
0x140d   :  { %v2891_v46 = vsub.f32 %v2883_v40, %v2889_v3 }
0x140f   :  { %v2894_v47 = vmul.f32 1.442695, %v2891_v46  ;;  %v2886_v48 = vpop.xlane.xlu1 %2885 }
0x1410   :  { %v2890_v49 = vsub.f32 %v2882_v43, %v2886_v48 }
0x1411   :  { %3661 = vpow2.f32 %v2894_v47 }
0x1412   :  { %v2892_v50 = vmul.f32 1.442695, %v2890_v49 }
0x1413   :  { %v2907_v52 = vpop.permute.xlu1 %2906 }
0x1414   :  { %3663 = vpow2.f32 %v2892_v50  ;;  %3540 = vmatpush3.msra.mxu1 %v2907_v52 }
0x1415   :  { %3577 = vmatprep.subr.bf16.mxu1 %v3576_v14 }
0x1417   :  { %v2377_v54 = vpop.permute.xlu1 %2376 }
0x1418   :  { %2382 = vst.msk [vmem:[#allocation3] sm:$0xff] %vm836_vm4, %v2377_v54 }
0x141b   :  { %v3662_v53 = vpop.eup %3661  ;;  %v2379_v55 = vpop.permute.xlu1 %2378 }
0x141c   :  { %2383 = vst.msk [vmem:[#allocation3 + $0x8] sm:$0xff] %vm836_vm4, %v2379_v55  ;;  %v2899_v56 = vsel %vm172_vm3, %v3662_v53, 0.0 }
0x141d   :  { %2900 = vadd.xlane.f32.xlu0 %v2899_v56 }
0x141e   :  { %v3664_v57 = vpop.eup %3663 }
0x141f   :  { %v2719_v58 = vpop.permute.xlu1 %2718  ;;  %v2896_v59 = vsel %vm172_vm3, %v3664_v57, 0.0 }
0x1420   :  { %2724 = vst.msk [vmem:[#allocation3] sm:$0xff] %vm1175_vm5, %v2719_v58 }
0x1421   :  { %2897 = vadd.xlane.f32.xlu0 %v2896_v59 }
0x1437   :  { %2982 = vrot.lane.b32.xlu0 %v4079_v51, %s3776_s20 }
0x143b   :  { %2720 = vrot.lane.b32.xlu0 %v2712_v35, %s3777_s21 }
0x14aa   :  { %v2901_v60 = vpop.xlane.xlu0 %2900 }
0x14ab   :  { %3665 = vrcp.f32 %v2901_v60 }
0x14ae   :  { %v2898_v61 = vpop.xlane.xlu0 %2897 }
0x14af   :  { %3667 = vrcp.f32 %v2898_v61 }
0x14b2   :  { %v2983_v62 = vpop.permute.xlu0 %2982 }
0x14b3   :  { %3545 = vmatpush3.msra.mxu0 %v2983_v62 }
0x14b5   :  { %v3666_v63 = vpop.eup %3665 }
0x14b6   :  { %v2905_v0 = vmul.f32 %v3666_v63, %v3662_v53  ;;  %v2721_v1 = vpop.permute.xlu0 %2720 }
0x14b7   :  { %2725 = vst.msk [vmem:[#allocation3 + $0x8] sm:$0xff] %vm1175_vm5, %v2721_v1 }
0x14b8   :  { %3547 = vmatmul.mubr.msk.f32.vlgmr.msra.gmra.mrb[36].mxu0 %vm172_vm3, %v2905_v0 }
0x14b9   :  { %v3668_v2 = vpop.eup %3667 }
0x14ba   :  { %v2904_v4 = vmul.f32 %v3668_v2, %v3664_v57 }
0x14bc   :  { %3542 = vmatmul.mubr.msk.f32.vlgmr.msra.gmra.mrb[30].mxu1 %vm172_vm3, %v2904_v4 }
0x14bd   :  { %3579 = vmatpush3.bf16.msra.mxu1 %v3576_v14 }
0x14be   :  { %3581 = vmatprep.subr.bf16.mxu1 %v3580_v20 }
0x14c1   :  { %3583 = vmatpush3.bf16.msra.mxu1 %v3580_v20 }
0x158b   :  { %v3054_v51 = vpop.f32.mrb[36].mxu0 }
0x158c   :  { %3062 = vrot.lane.b32.xlu0 %v3054_v51, %s3778_s12  ;;  %v3548_v5 = vpop.f32.mrb[37].mxu0 }
0x158f   :  { %v2978_v7 = vpop.f32.mrb[30].mxu1 }
0x1590   :  { %3060 = vrot.lane.b32.xlu1 %v2978_v7, %s3778_s12  ;;  %v3543_v10 = vpop.f32.mrb[31].mxu1 }
0x15fe   :  { %v3063_v11 = vpop.permute.xlu0 %3062 }
0x15ff   :  { %3067 = vst.msk [vmem:[#allocation3 + $0x8] sm:$0xff] %vm1514_vm6, %v3063_v11 }
0x1602   :  { %v3061_v15 = vpop.permute.xlu1 %3060 }
0x1603   :  { %3066 = vst.msk [vmem:[#allocation3] sm:$0xff] %vm1514_vm6, %v3061_v15 }
0x1606   :  { %v3069_v16 = vld [vmem:[#allocation3 + $0x8] sm:$0xff] }
0x1607   :  { %3074 = vrot.lane.b32.xlu0 %v3069_v16, %s3779_s13 }
0x160a   :  { %v3068_v17 = vld [vmem:[#allocation3] sm:$0xff] }
0x160b   :  { %3072 = vrot.lane.b32.xlu1 %v3068_v17, %s3779_s13 }
0x1679   :  { %v3075_v21 = vpop.permute.xlu0 %3074 }
0x167a   :  { %v3079_v22 = vadd.f32 %v3075_v21, %v3899_v6 }
0x167c   :  { %3095 = vrot.lane.b32.xlu0 %v3079_v22, %s3779_s13 }
0x167d   :  { %v3073_v23 = vpop.permute.xlu1 %3072 }
0x167e   :  { %v3078_v24 = vadd.f32 %v3073_v23, %v3901_v8 }
0x1680   :  { %3093 = vrot.lane.b32.xlu1 %v3078_v24, %s3779_s13 }
0x16ee   :  { %v3096_v26 = vpop.permute.xlu0 %3095 }
0x16f2   :  { %v3094_v25 = vpop.permute.xlu1 %3093 }
0x16f3   :  { %3557 = vmatprep.mubr.msk.f32.mxu1 %vm1532_vm7, %v3094_v25 }
0x16f4   :  { %3558 = vmatmul.mubr.msk.f32.vlgmr.msra.gmra.mrb[32].mxu1 %vm1532_vm7, %v3096_v26 }
0x17c7   :  { %v3559_v28 = vpop.f32.mrb[32].mxu1 }
0x17c8   :  { %v3173_v29 = vadd.f32 %v3559_v28, %v3274_v27  ;;  %v3167_v6 = vpop.f32.mrb[33].mxu1 }
0x17c9   :  { %v3168_v30 = vadd.f32 %v3274_v27, %v3167_v6 }
0x17ca   :  { %v3177_v31 = vmax.f32 %v3173_v29, 0.0 }
0x17cb   :  { %v3176_v32 = vmax.f32 %v3168_v30, 0.0 }
0x17cc   :  { %3182 = vrot.lane.b32.xlu0 %v3177_v31, %s3779_s13 }
0x17cd   :  { %3180 = vrot.lane.b32.xlu1 %v3176_v32, %s3779_s13 }
0x183e   :  { %v3183_v8 = vpop.permute.xlu0 %3182 }
0x183f   :  { %v3187_v33 = vadd.f32 %v3183_v8, %v3079_v22  ;;  %v3181_v34 = vpop.permute.xlu1 %3180 }
0x1840   :  { %v3186_v35 = vadd.f32 %v3181_v34, %v3078_v24 }
0x1841   :  { %3192 = vrot.lane.b32.xlu0 %v3187_v33, %s3779_s13 }
0x1842   :  { %3190 = vrot.lane.b32.xlu1 %v3186_v35, %s3779_s13 }
0x18b3   :  { %v3193_v36 = vpop.permute.xlu0 %3192 }
0x18b4   :  { %3197 = vst.msk [vmem:[#allocation10 + $0x8] sm:$0xff] %vm1532_vm7, %v3193_v36  ;;  %v3191_v37 = vpop.permute.xlu1 %3190 }
0x18b5   :  { %3196 = vst.msk [vmem:[#allocation10] sm:$0xff] %vm1532_vm7, %v3191_v37 }
0x18b6   :  { %3746 = shalt.err (!%p3743_p0)
}
0x18b7   :  { %s3747_s14 = scalar_lea.hbm %s4263_s10, 256 }
0x18b8   :  { %p3748_p1 = scmp.ne.s32.totalorder %s4263_s10, %s3747_s14  ;;  %p3751_p2 = scmp.lt.u32.totalorder %s3747_s14, %s4263_s10 }
0x18ba   :  { %p3753_p3 = pnand %p3751_p2, %p3748_p1 }
0x18bc   :  { %3756 = shalt.err (!%p3753_p3)
}
0x18bd   :  { %3209 = dma.vmem_to_hbm [thread:$0]  %s3204_s9, 256, %s4263_s10, [#allocation6], %s3764_s23, %s3764_s23, %s3765_s24  }
0x18be   :  { %3761 = dma.done.wait [#allocation6], 256  }
0x18bf   :  { %3762 = vsyncadd [#allocation6], 4294967040 }
0x18c0   :  { %3213 = vsyncpa [#allocation5], 1 }
0x18c1   :  { %3214 = vsyncpa [#allocation8], 1 }
0x18c2   :  { %3215 = vsyncpa [#allocation6], 1 }

</bundles_post_ra>
